<compile_context>
chip_gen: v5e
topology: v5e:2x2
jax: 0.10.0
libtpu: 0.0.40
codegen_flags: <defaults>
</compile_context>

<pallas_src>
import functools

import jax
import jax.numpy as jnp
from jax import lax
from jax.experimental import pallas as pl
from jax.experimental.pallas import tpu as pltpu

BN_EPS = 1e-5


def _sj_edge_net_kernel(x_ref, w1_ref, w2_ref, w3_ref, gb_ref, o_ref, *, etile):
    i = pl.program_id(0)
    tile_n = x_ref.shape[0]
    n = o_ref.shape[0]
    f_pad = o_ref.shape[1]

    # ---- Layer-1 matmul for this batch tile, streamed straight into the resident
    # output block (which doubles as the layer-1 pre-activation buffer).
    row0 = pl.multiple_of(i * tile_n, tile_n)
    o_ref[pl.ds(row0, tile_n), :] = jnp.dot(
        x_ref[...], w1_ref[...], preferred_element_type=jnp.float32)

    # ---- Last grid step: full-batch BN stats + layers 2/3, all in place, tiled.
    @pl.when(i == pl.num_programs(0) - 1)
    def _():
        n_t = n // etile
        inv_n = jnp.float32(1.0 / n)

        def col_stats(buf_ref):
            # Two-pass (centered -> numerically safe) batch stats, tiled over row
            # chunks so live temporaries stay O(etile x F).  Returns (1, F) f32.
            def sum_body(t, acc):
                sl = pl.ds(pl.multiple_of(t * etile, etile), etile)
                return acc + jnp.sum(buf_ref[sl, :], axis=0, keepdims=True)

            mean = lax.fori_loop(
                0, n_t, sum_body, jnp.zeros((1, f_pad), jnp.float32)) * inv_n

            def var_body(t, acc):
                sl = pl.ds(pl.multiple_of(t * etile, etile), etile)
                d = buf_ref[sl, :] - mean
                return acc + jnp.sum(d * d, axis=0, keepdims=True)

            var = lax.fori_loop(
                0, n_t, var_body, jnp.zeros((1, f_pad), jnp.float32)) * inv_n
            return mean, var

        def bn_scale_shift(mean, var, g, be):
            scale = g * lax.rsqrt(var + BN_EPS)   # (1, F) — EUP rsqrt
            shift = be - mean * scale             # fold mean into the shift
            return scale, shift

        g1, be1 = gb_ref[0:1, :], gb_ref[1:2, :]
        g2, be2 = gb_ref[2:3, :], gb_ref[3:4, :]
        g3, be3 = gb_ref[4:5, :], gb_ref[5:6, :]

        # Layer-1 BN+ReLU fused with the layer-2 matmul, in place, tile by tile.
        scale1, shift1 = bn_scale_shift(*col_stats(o_ref), g1, be1)

        def l2_body(t, carry):
            sl = pl.ds(pl.multiple_of(t * etile, etile), etile)
            h = jnp.maximum(o_ref[sl, :] * scale1 + shift1, 0.0)
            o_ref[sl, :] = jnp.dot(h.astype(w2_ref.dtype), w2_ref[...],
                                   preferred_element_type=jnp.float32)
            return carry

        lax.fori_loop(0, n_t, l2_body, 0)

        # Layer-2 BN+ReLU fused with the layer-3 matmul, in place.
        scale2, shift2 = bn_scale_shift(*col_stats(o_ref), g2, be2)

        def l3_body(t, carry):
            sl = pl.ds(pl.multiple_of(t * etile, etile), etile)
            h = jnp.maximum(o_ref[sl, :] * scale2 + shift2, 0.0)
            o_ref[sl, :] = jnp.dot(h.astype(w3_ref.dtype), w3_ref[...],
                                   preferred_element_type=jnp.float32)
            return carry

        lax.fori_loop(0, n_t, l3_body, 0)

        # Final layer-3 BN+ReLU, in place (lane-dense stores, f_pad multiple of 128).
        scale3, shift3 = bn_scale_shift(*col_stats(o_ref), g3, be3)

        def fin_body(t, carry):
            sl = pl.ds(pl.multiple_of(t * etile, etile), etile)
            o_ref[sl, :] = jnp.maximum(o_ref[sl, :] * scale3 + shift3, 0.0)
            return carry

        lax.fori_loop(0, n_t, fin_body, 0)


def _round_up(x, m):
    return (x + m - 1) // m * m


def _pick_tile_n(n):
    # Collapse the grid to one step for small batches: each grid step costs
    # ~0.35 us while the per-tile matmul here is a trivial MXU pass.  Only
    # stream the batch axis when N is large enough to be worth pipelining.
    if n <= 1024:
        return n
    for t in (1024, 512, 256):
        if n % t == 0:
            return t
    return n


def _vmem_capacity_bytes():
    try:
        return int(pltpu.get_tpu_info().vmem_capacity_bytes)
    except Exception:
        return 64 * 2 ** 20  # conservative fallback (v7x physical VMEM)


def sj_edge_net_forward(x, params, *, tile_n=None, mxu_dtype=jnp.bfloat16,
                        return_padded=False):
    """x: [N, 2*in_size] float32; params: dict of per-layer weights.

    Forward-activation-equivalent to PyTorch SJEdgeNet in training mode (batch
    statistics); BatchNorm running-stat buffers are not updated, and the Linear
    biases are folded away (exact under training-mode BN)."""
    n, fin = x.shape
    layer_size = params["w3"].shape[1]
    f_pad = _round_up(layer_size, 128)

    if tile_n is None:
        tile_n = _pick_tile_n(n)
    assert n % tile_n == 0, "batch must be divisible by tile_n"

    def pad2d(a, rows, cols):
        return jnp.pad(a, ((0, rows - a.shape[0]), (0, cols - a.shape[1])))

    # Feature (lane) dims zero-padded to 128; contraction dim K=fin kept unpadded
    # (padding K only multiplies DMA bytes / MACs with zero useful work).
    w1 = pad2d(params["w1"], fin, f_pad).astype(mxu_dtype)
    w2 = pad2d(params["w2"], f_pad, f_pad).astype(mxu_dtype)
    w3 = pad2d(params["w3"], f_pad, f_pad).astype(mxu_dtype)

    # Pack the six (1, layer_size) gamma/beta rows into one (8, f_pad) f32 tile.
    gb = jnp.concatenate(
        [params["g1"], params["be1"],
         params["g2"], params["be2"],
         params["g3"], params["be3"]], axis=0)
    gb = pad2d(gb, 8, f_pad)

    xq = x.astype(mxu_dtype)

    # VMEM budget: double-buffered x tiles (bf16), single-buffered resident
    # weights + gamma/beta, the resident output block (budget 2x in case the
    # pipeline keeps a writeback copy), and O(tile x F) epilogue temporaries.
    est = (2 * tile_n * fin * 2
           + (w1.size + w2.size + w3.size) * 2
           + gb.size * 4
           + 2 * n * f_pad * 4
           + 4 * tile_n * f_pad * 4)
    cap = _vmem_capacity_bytes()
    vmem_limit = int(min(max(2 * est, 32 * 2 ** 20), int(0.85 * cap)))

    kernel = functools.partial(_sj_edge_net_kernel, etile=tile_n)

    out = pl.pallas_call(
        kernel,
        out_shape=jax.ShapeDtypeStruct((n, f_pad), jnp.float32),
        grid_spec=pltpu.PrefetchScalarGridSpec(
            num_scalar_prefetch=0,
            grid=(n // tile_n,),
            in_specs=[
                pl.BlockSpec((tile_n, fin), lambda i: (i, 0)),          # x, streamed
                pl.BlockSpec(memory_space=pltpu.MemorySpace.VMEM),      # w1 resident (1 buf)
                pl.BlockSpec(memory_space=pltpu.MemorySpace.VMEM),      # w2
                pl.BlockSpec(memory_space=pltpu.MemorySpace.VMEM),      # w3
                pl.BlockSpec(memory_space=pltpu.MemorySpace.VMEM),      # packed gamma/beta
            ],
            out_specs=pl.BlockSpec((n, f_pad), lambda i: (0, 0)),       # resident output
        ),
        compiler_params=pltpu.CompilerParams(
            dimension_semantics=("arbitrary",),   # output carried across the axis
            vmem_limit_bytes=vmem_limit,
        ),
    )(xq, w1, w2, w3, gb)

    if return_padded:
        return out            # (n, f_pad); padded lanes are exactly zero
    return out[:, :layer_size]


def sj_edge_net_reference(x, params, mxu_dtype=jnp.bfloat16):
    """Pure-JAX reference with the same numerics (bf16 MXU inputs, f32 BN)."""
    h = x
    for idx in (1, 2, 3):
        y = jnp.dot(h.astype(mxu_dtype), params[f"w{idx}"].astype(mxu_dtype),
                    preferred_element_type=jnp.float32)
        # Linear bias omitted: cancels exactly under training-mode BatchNorm.
        mean = jnp.mean(y, axis=0, keepdims=True)
        var = jnp.mean((y - mean) ** 2, axis=0, keepdims=True)
        y = (y - mean) * lax.rsqrt(var + BN_EPS)
        y = y * params[f"g{idx}"] + params[f"be{idx}"]
        h = jnp.maximum(y, 0.0)
    return h


def init_params(key, in_size, layer_size):
    """PyTorch-default-style init (uniform +/- 1/sqrt(fan_in) for Linear,
    gamma=1 / beta=0 for BatchNorm1d).  Linear biases exist for parity with the
    PyTorch module but are unused (they cancel under training-mode BN)."""
    dims = [(2 * in_size, layer_size),
            (layer_size, layer_size),
            (layer_size, layer_size)]
    params = {}
    for idx, (fan_in, fan_out) in enumerate(dims, start=1):
        key, kw, kb = jax.random.split(key, 3)
        bound = 1.0 / jnp.sqrt(jnp.float32(fan_in))
        params[f"w{idx}"] = jax.random.uniform(
            kw, (fan_in, fan_out), jnp.float32, -bound, bound)
        params[f"b{idx}"] = jax.random.uniform(
            kb, (1, fan_out), jnp.float32, -bound, bound)  # unused (BN cancels it)
        params[f"g{idx}"] = jnp.ones((1, fan_out), jnp.float32)
        params[f"be{idx}"] = jnp.zeros((1, fan_out), jnp.float32)
    return params


if __name__ == "__main__":
    key = jax.random.PRNGKey(0)
    in_size = 16
    layer_size = 32
    batch = 256   # small batch -> tile_n auto-collapses to N (single grid step)

    key, kx, kp = jax.random.split(key, 3)
    x = jax.random.normal(kx, (batch, 2 * in_size), jnp.float32)
    params = init_params(kp, in_size, layer_size)

    out = sj_edge_net_forward(x, params)
    jax.block_until_ready(out)

    ref = sj_edge_net_reference(x, params)
    assert out.shape == (batch, layer_size)
    assert bool(jnp.all(out >= 0.0))                      # ReLU output
    assert bool(jnp.allclose(out, ref, atol=1e-3, rtol=1e-3))
    print("KERNEL_OK")
</pallas_src>

<mosaic_0001>
module attributes {stable_mosaic.version = 11 : i64} {
  func.func @_sj_edge_net_kernel(%arg0: i32, %arg1: memref<256x32xbf16, #tpu.memory_space<vmem>>, %arg2: memref<32x128xbf16, #tpu.memory_space<vmem>>, %arg3: memref<128x128xbf16, #tpu.memory_space<vmem>>, %arg4: memref<128x128xbf16, #tpu.memory_space<vmem>>, %arg5: memref<8x128xf32, #tpu.memory_space<vmem>>, %arg6: memref<256x128xf32, #tpu.memory_space<vmem>>) attributes {dimension_semantics = [#tpu.dimension_semantics<arbitrary>], iteration_bounds = array<i64: 1>, scalar_prefetch = 0 : i64, scratch_operands = 0 : i64, tpu.core_type = #tpu.core_type<tc>, window_params = [{transform_indices = @transform_0, window_bounds = array<i64: 256, 32>}, {pipeline_mode = #tpu.pipeline_mode<synchronous>, transform_indices = @transform_1, window_bounds = array<i64: 32, 128>}, {pipeline_mode = #tpu.pipeline_mode<synchronous>, transform_indices = @transform_2, window_bounds = array<i64: 128, 128>}, {pipeline_mode = #tpu.pipeline_mode<synchronous>, transform_indices = @transform_3, window_bounds = array<i64: 128, 128>}, {pipeline_mode = #tpu.pipeline_mode<synchronous>, transform_indices = @transform_4, window_bounds = array<i64: 8, 128>}, {pipeline_mode = #tpu.pipeline_mode<synchronous>, transform_indices = @transform_5, window_bounds = array<i64: 256, 128>}]} {
    %c256_i32 = arith.constant 256 : i32
    %0 = arith.muli %arg0, %c256_i32 : i32
    %1 = tpu.assume_multiple %0, 256 : i32
    %c0 = arith.constant 0 : index
    %c0_0 = arith.constant 0 : index
    %2 = vector.load %arg1[%c0, %c0_0] : memref<256x32xbf16, #tpu.memory_space<vmem>>, vector<256x32xbf16>
    %c0_1 = arith.constant 0 : index
    %c0_2 = arith.constant 0 : index
    %3 = vector.load %arg2[%c0_1, %c0_2] : memref<32x128xbf16, #tpu.memory_space<vmem>>, vector<32x128xbf16>
    %cst = arith.constant dense<0.000000e+00> : vector<256x128xf32>
    %4 = tpu.matmul %2, %3, %cst {dimension_numbers = #tpu.dot_dimension_numbers<[1], [0], [0], [1], [0, 0, 1, 1], [], []>} : vector<256x32xbf16>, vector<32x128xbf16>, vector<256x128xf32> -> vector<256x128xf32>
    %5 = arith.index_cast %1 : i32 to index
    %c0_3 = arith.constant 0 : index
    %6 = vector.load %arg6[%5, %c0_3] : memref<256x128xf32, #tpu.memory_space<vmem>>, vector<256x128xf32>
    tpu.vector_store %arg6[%5, %c0_3], %4 {strides = array<i32>} : memref<256x128xf32, #tpu.memory_space<vmem>>, vector<256x128xf32>,
    %c0_i32 = arith.constant 0 : i32
    %7 = arith.cmpi eq, %arg0, %c0_i32 : i32
    %8 = arith.extui %7 : i1 to i32
    %c0_i32_4 = arith.constant 0 : i32
    %9 = arith.cmpi ne, %8, %c0_i32_4 : i32
    scf.if %9 {
      %c0_5 = arith.constant 0 : index
      %c0_6 = arith.constant 0 : index
      %10 = vector.load %arg5[%c0_5, %c0_6] : memref<8x128xf32, #tpu.memory_space<vmem>>, vector<1x128xf32>
      %c1 = arith.constant 1 : index
      %c0_7 = arith.constant 0 : index
      %11 = vector.load %arg5[%c1, %c0_7] : memref<8x128xf32, #tpu.memory_space<vmem>>, vector<1x128xf32>
      %c2 = arith.constant 2 : index
      %c0_8 = arith.constant 0 : index
      %12 = vector.load %arg5[%c2, %c0_8] : memref<8x128xf32, #tpu.memory_space<vmem>>, vector<1x128xf32>
      %c3 = arith.constant 3 : index
      %c0_9 = arith.constant 0 : index
      %13 = vector.load %arg5[%c3, %c0_9] : memref<8x128xf32, #tpu.memory_space<vmem>>, vector<1x128xf32>
      %c4 = arith.constant 4 : index
      %c0_10 = arith.constant 0 : index
      %14 = vector.load %arg5[%c4, %c0_10] : memref<8x128xf32, #tpu.memory_space<vmem>>, vector<1x128xf32>
      %c5 = arith.constant 5 : index
      %c0_11 = arith.constant 0 : index
      %15 = vector.load %arg5[%c5, %c0_11] : memref<8x128xf32, #tpu.memory_space<vmem>>, vector<1x128xf32>
      %cst_12 = arith.constant 0.000000e+00 : f32
      %16 = vector.broadcast %cst_12 : f32 to vector<1x128xf32>
      %c0_i32_13 = arith.constant 0 : i32
      %c256_i32_14 = arith.constant 256 : i32
      %17 = arith.muli %c0_i32_13, %c256_i32_14 : i32
      %18 = tpu.assume_multiple %17, 256 : i32
      %19 = arith.index_cast %18 : i32 to index
      %c0_15 = arith.constant 0 : index
      %20 = vector.load %arg6[%19, %c0_15] : memref<256x128xf32, #tpu.memory_space<vmem>>, vector<256x128xf32>
      %cst_16 = arith.constant dense<0.000000e+00> : vector<128xf32>
      %21 = vector.multi_reduction <add>, %20, %cst_16 [0] : vector<256x128xf32> to vector<128xf32>
      %22 = vector.shape_cast %21 : vector<128xf32> to vector<1x128xf32>
      %23 = arith.addf %16, %22 : vector<1x128xf32>
      %c1_i32 = arith.constant 1 : i32
      %cst_17 = arith.constant 3.906250e-03 : f32
      %24 = vector.broadcast %cst_17 : f32 to vector<1x128xf32>
      %25 = arith.mulf %23, %24 : vector<1x128xf32>
      %cst_18 = arith.constant 0.000000e+00 : f32
      %26 = vector.broadcast %cst_18 : f32 to vector<1x128xf32>
      %c0_i32_19 = arith.constant 0 : i32
      %c256_i32_20 = arith.constant 256 : i32
      %27 = arith.muli %c0_i32_19, %c256_i32_20 : i32
      %28 = tpu.assume_multiple %27, 256 : i32
      %29 = arith.index_cast %28 : i32 to index
      %c0_21 = arith.constant 0 : index
      %30 = vector.load %arg6[%29, %c0_21] : memref<256x128xf32, #tpu.memory_space<vmem>>, vector<256x128xf32>
      %31 = vector.broadcast %25 : vector<1x128xf32> to vector<256x128xf32>
      %32 = arith.subf %30, %31 : vector<256x128xf32>
      %33 = arith.mulf %32, %32 : vector<256x128xf32>
      %cst_22 = arith.constant dense<0.000000e+00> : vector<128xf32>
      %34 = vector.multi_reduction <add>, %33, %cst_22 [0] : vector<256x128xf32> to vector<128xf32>
      %35 = vector.shape_cast %34 : vector<128xf32> to vector<1x128xf32>
      %36 = arith.addf %26, %35 : vector<1x128xf32>
      %c1_i32_23 = arith.constant 1 : i32
      %cst_24 = arith.constant 3.906250e-03 : f32
      %37 = vector.broadcast %cst_24 : f32 to vector<1x128xf32>
      %38 = arith.mulf %36, %37 : vector<1x128xf32>
      %cst_25 = arith.constant 9.99999974E-6 : f32
      %39 = vector.broadcast %cst_25 : f32 to vector<1x128xf32>
      %40 = arith.addf %38, %39 : vector<1x128xf32>
      %41 = math.rsqrt %40 : vector<1x128xf32>
      %42 = arith.mulf %10, %41 : vector<1x128xf32>
      %43 = arith.mulf %25, %42 : vector<1x128xf32>
      %44 = arith.subf %11, %43 : vector<1x128xf32>
      %c0_i32_26 = arith.constant 0 : i32
      %c256_i32_27 = arith.constant 256 : i32
      %45 = arith.muli %c0_i32_26, %c256_i32_27 : i32
      %46 = tpu.assume_multiple %45, 256 : i32
      %47 = arith.index_cast %46 : i32 to index
      %c0_28 = arith.constant 0 : index
      %48 = vector.load %arg6[%47, %c0_28] : memref<256x128xf32, #tpu.memory_space<vmem>>, vector<256x128xf32>
      %49 = vector.broadcast %42 : vector<1x128xf32> to vector<256x128xf32>
      %50 = arith.mulf %48, %49 : vector<256x128xf32>
      %51 = vector.broadcast %44 : vector<1x128xf32> to vector<256x128xf32>
      %52 = arith.addf %50, %51 : vector<256x128xf32>
      %cst_29 = arith.constant 0.000000e+00 : f32
      %53 = vector.broadcast %cst_29 : f32 to vector<256x128xf32>
      %54 = arith.maximumf %52, %53 : vector<256x128xf32>
      %55 = arith.truncf %54 : vector<256x128xf32> to vector<256x128xbf16>
      %c0_30 = arith.constant 0 : index
      %c0_31 = arith.constant 0 : index
      %56 = vector.load %arg3[%c0_30, %c0_31] : memref<128x128xbf16, #tpu.memory_space<vmem>>, vector<128x128xbf16>
      %cst_32 = arith.constant dense<0.000000e+00> : vector<256x128xf32>
      %57 = tpu.matmul %55, %56, %cst_32 {dimension_numbers = #tpu.dot_dimension_numbers<[1], [0], [0], [1], [0, 0, 1, 1], [], []>} : vector<256x128xbf16>, vector<128x128xbf16>, vector<256x128xf32> -> vector<256x128xf32>
      %58 = arith.index_cast %46 : i32 to index
      %c0_33 = arith.constant 0 : index
      %59 = vector.load %arg6[%58, %c0_33] : memref<256x128xf32, #tpu.memory_space<vmem>>, vector<256x128xf32>
      tpu.vector_store %arg6[%58, %c0_33], %57 {strides = array<i32>} : memref<256x128xf32, #tpu.memory_space<vmem>>, vector<256x128xf32>,
      %c1_i32_34 = arith.constant 1 : i32
      %cst_35 = arith.constant 0.000000e+00 : f32
      %60 = vector.broadcast %cst_35 : f32 to vector<1x128xf32>
      %c0_i32_36 = arith.constant 0 : i32
      %c256_i32_37 = arith.constant 256 : i32
      %61 = arith.muli %c0_i32_36, %c256_i32_37 : i32
      %62 = tpu.assume_multiple %61, 256 : i32
      %63 = arith.index_cast %62 : i32 to index
      %c0_38 = arith.constant 0 : index
      %64 = vector.load %arg6[%63, %c0_38] : memref<256x128xf32, #tpu.memory_space<vmem>>, vector<256x128xf32>
      %cst_39 = arith.constant dense<0.000000e+00> : vector<128xf32>
      %65 = vector.multi_reduction <add>, %64, %cst_39 [0] : vector<256x128xf32> to vector<128xf32>
      %66 = vector.shape_cast %65 : vector<128xf32> to vector<1x128xf32>
      %67 = arith.addf %60, %66 : vector<1x128xf32>
      %c1_i32_40 = arith.constant 1 : i32
      %cst_41 = arith.constant 3.906250e-03 : f32
      %68 = vector.broadcast %cst_41 : f32 to vector<1x128xf32>
      %69 = arith.mulf %67, %68 : vector<1x128xf32>
      %cst_42 = arith.constant 0.000000e+00 : f32
      %70 = vector.broadcast %cst_42 : f32 to vector<1x128xf32>
      %c0_i32_43 = arith.constant 0 : i32
      %c256_i32_44 = arith.constant 256 : i32
      %71 = arith.muli %c0_i32_43, %c256_i32_44 : i32
      %72 = tpu.assume_multiple %71, 256 : i32
      %73 = arith.index_cast %72 : i32 to index
      %c0_45 = arith.constant 0 : index
      %74 = vector.load %arg6[%73, %c0_45] : memref<256x128xf32, #tpu.memory_space<vmem>>, vector<256x128xf32>
      %75 = vector.broadcast %69 : vector<1x128xf32> to vector<256x128xf32>
      %76 = arith.subf %74, %75 : vector<256x128xf32>
      %77 = arith.mulf %76, %76 : vector<256x128xf32>
      %cst_46 = arith.constant dense<0.000000e+00> : vector<128xf32>
      %78 = vector.multi_reduction <add>, %77, %cst_46 [0] : vector<256x128xf32> to vector<128xf32>
      %79 = vector.shape_cast %78 : vector<128xf32> to vector<1x128xf32>
      %80 = arith.addf %70, %79 : vector<1x128xf32>
      %c1_i32_47 = arith.constant 1 : i32
      %cst_48 = arith.constant 3.906250e-03 : f32
      %81 = vector.broadcast %cst_48 : f32 to vector<1x128xf32>
      %82 = arith.mulf %80, %81 : vector<1x128xf32>
      %cst_49 = arith.constant 9.99999974E-6 : f32
      %83 = vector.broadcast %cst_49 : f32 to vector<1x128xf32>
      %84 = arith.addf %82, %83 : vector<1x128xf32>
      %85 = math.rsqrt %84 : vector<1x128xf32>
      %86 = arith.mulf %12, %85 : vector<1x128xf32>
      %87 = arith.mulf %69, %86 : vector<1x128xf32>
      %88 = arith.subf %13, %87 : vector<1x128xf32>
      %c0_i32_50 = arith.constant 0 : i32
      %c256_i32_51 = arith.constant 256 : i32
      %89 = arith.muli %c0_i32_50, %c256_i32_51 : i32
      %90 = tpu.assume_multiple %89, 256 : i32
      %91 = arith.index_cast %90 : i32 to index
      %c0_52 = arith.constant 0 : index
      %92 = vector.load %arg6[%91, %c0_52] : memref<256x128xf32, #tpu.memory_space<vmem>>, vector<256x128xf32>
      %93 = vector.broadcast %86 : vector<1x128xf32> to vector<256x128xf32>
      %94 = arith.mulf %92, %93 : vector<256x128xf32>
      %95 = vector.broadcast %88 : vector<1x128xf32> to vector<256x128xf32>
      %96 = arith.addf %94, %95 : vector<256x128xf32>
      %cst_53 = arith.constant 0.000000e+00 : f32
      %97 = vector.broadcast %cst_53 : f32 to vector<256x128xf32>
      %98 = arith.maximumf %96, %97 : vector<256x128xf32>
      %99 = arith.truncf %98 : vector<256x128xf32> to vector<256x128xbf16>
      %c0_54 = arith.constant 0 : index
      %c0_55 = arith.constant 0 : index
      %100 = vector.load %arg4[%c0_54, %c0_55] : memref<128x128xbf16, #tpu.memory_space<vmem>>, vector<128x128xbf16>
      %cst_56 = arith.constant dense<0.000000e+00> : vector<256x128xf32>
      %101 = tpu.matmul %99, %100, %cst_56 {dimension_numbers = #tpu.dot_dimension_numbers<[1], [0], [0], [1], [0, 0, 1, 1], [], []>} : vector<256x128xbf16>, vector<128x128xbf16>, vector<256x128xf32> -> vector<256x128xf32>
      %102 = arith.index_cast %90 : i32 to index
      %c0_57 = arith.constant 0 : index
      %103 = vector.load %arg6[%102, %c0_57] : memref<256x128xf32, #tpu.memory_space<vmem>>, vector<256x128xf32>
      tpu.vector_store %arg6[%102, %c0_57], %101 {strides = array<i32>} : memref<256x128xf32, #tpu.memory_space<vmem>>, vector<256x128xf32>,
      %c1_i32_58 = arith.constant 1 : i32
      %cst_59 = arith.constant 0.000000e+00 : f32
      %104 = vector.broadcast %cst_59 : f32 to vector<1x128xf32>
      %c0_i32_60 = arith.constant 0 : i32
      %c256_i32_61 = arith.constant 256 : i32
      %105 = arith.muli %c0_i32_60, %c256_i32_61 : i32
      %106 = tpu.assume_multiple %105, 256 : i32
      %107 = arith.index_cast %106 : i32 to index
      %c0_62 = arith.constant 0 : index
      %108 = vector.load %arg6[%107, %c0_62] : memref<256x128xf32, #tpu.memory_space<vmem>>, vector<256x128xf32>
      %cst_63 = arith.constant dense<0.000000e+00> : vector<128xf32>
      %109 = vector.multi_reduction <add>, %108, %cst_63 [0] : vector<256x128xf32> to vector<128xf32>
      %110 = vector.shape_cast %109 : vector<128xf32> to vector<1x128xf32>
      %111 = arith.addf %104, %110 : vector<1x128xf32>
      %c1_i32_64 = arith.constant 1 : i32
      %cst_65 = arith.constant 3.906250e-03 : f32
      %112 = vector.broadcast %cst_65 : f32 to vector<1x128xf32>
      %113 = arith.mulf %111, %112 : vector<1x128xf32>
      %cst_66 = arith.constant 0.000000e+00 : f32
      %114 = vector.broadcast %cst_66 : f32 to vector<1x128xf32>
      %c0_i32_67 = arith.constant 0 : i32
      %c256_i32_68 = arith.constant 256 : i32
      %115 = arith.muli %c0_i32_67, %c256_i32_68 : i32
      %116 = tpu.assume_multiple %115, 256 : i32
      %117 = arith.index_cast %116 : i32 to index
      %c0_69 = arith.constant 0 : index
      %118 = vector.load %arg6[%117, %c0_69] : memref<256x128xf32, #tpu.memory_space<vmem>>, vector<256x128xf32>
      %119 = vector.broadcast %113 : vector<1x128xf32> to vector<256x128xf32>
      %120 = arith.subf %118, %119 : vector<256x128xf32>
      %121 = arith.mulf %120, %120 : vector<256x128xf32>
      %cst_70 = arith.constant dense<0.000000e+00> : vector<128xf32>
      %122 = vector.multi_reduction <add>, %121, %cst_70 [0] : vector<256x128xf32> to vector<128xf32>
      %123 = vector.shape_cast %122 : vector<128xf32> to vector<1x128xf32>
      %124 = arith.addf %114, %123 : vector<1x128xf32>
      %c1_i32_71 = arith.constant 1 : i32
      %cst_72 = arith.constant 3.906250e-03 : f32
      %125 = vector.broadcast %cst_72 : f32 to vector<1x128xf32>
      %126 = arith.mulf %124, %125 : vector<1x128xf32>
      %cst_73 = arith.constant 9.99999974E-6 : f32
      %127 = vector.broadcast %cst_73 : f32 to vector<1x128xf32>
      %128 = arith.addf %126, %127 : vector<1x128xf32>
      %129 = math.rsqrt %128 : vector<1x128xf32>
      %130 = arith.mulf %14, %129 : vector<1x128xf32>
      %131 = arith.mulf %113, %130 : vector<1x128xf32>
      %132 = arith.subf %15, %131 : vector<1x128xf32>
      %c0_i32_74 = arith.constant 0 : i32
      %c256_i32_75 = arith.constant 256 : i32
      %133 = arith.muli %c0_i32_74, %c256_i32_75 : i32
      %134 = tpu.assume_multiple %133, 256 : i32
      %135 = arith.index_cast %134 : i32 to index
      %c0_76 = arith.constant 0 : index
      %136 = vector.load %arg6[%135, %c0_76] : memref<256x128xf32, #tpu.memory_space<vmem>>, vector<256x128xf32>
      %137 = vector.broadcast %130 : vector<1x128xf32> to vector<256x128xf32>
      %138 = arith.mulf %136, %137 : vector<256x128xf32>
      %139 = vector.broadcast %132 : vector<1x128xf32> to vector<256x128xf32>
      %140 = arith.addf %138, %139 : vector<256x128xf32>
      %cst_77 = arith.constant 0.000000e+00 : f32
      %141 = vector.broadcast %cst_77 : f32 to vector<256x128xf32>
      %142 = arith.maximumf %140, %141 : vector<256x128xf32>
      %143 = arith.index_cast %134 : i32 to index
      %c0_78 = arith.constant 0 : index
      %144 = vector.load %arg6[%143, %c0_78] : memref<256x128xf32, #tpu.memory_space<vmem>>, vector<256x128xf32>
      tpu.vector_store %arg6[%143, %c0_78], %142 {strides = array<i32>} : memref<256x128xf32, #tpu.memory_space<vmem>>, vector<256x128xf32>,
      %c1_i32_79 = arith.constant 1 : i32
    } else {
    }
    return
  }
  func.func @transform_0(%arg0: i32) -> (i32, i32) {
    %c0_i32 = arith.constant 0 : i32
    %c0_i32_0 = arith.constant 0 : i32
    return %arg0, %c0_i32 : i32, i32
  }
  func.func @transform_1(%arg0: i32) -> (i32, i32) {
    %c0_i32 = arith.constant 0 : i32
    %c0_i32_0 = arith.constant 0 : i32
    %c0_i32_1 = arith.constant 0 : i32
    return %c0_i32, %c0_i32_0 : i32, i32
  }
  func.func @transform_2(%arg0: i32) -> (i32, i32) {
    %c0_i32 = arith.constant 0 : i32
    %c0_i32_0 = arith.constant 0 : i32
    %c0_i32_1 = arith.constant 0 : i32
    return %c0_i32, %c0_i32_0 : i32, i32
  }
  func.func @transform_3(%arg0: i32) -> (i32, i32) {
    %c0_i32 = arith.constant 0 : i32
    %c0_i32_0 = arith.constant 0 : i32
    %c0_i32_1 = arith.constant 0 : i32
    return %c0_i32, %c0_i32_0 : i32, i32
  }
  func.func @transform_4(%arg0: i32) -> (i32, i32) {
    %c0_i32 = arith.constant 0 : i32
    %c0_i32_0 = arith.constant 0 : i32
    %c0_i32_1 = arith.constant 0 : i32
    return %c0_i32, %c0_i32_0 : i32, i32
  }
  func.func @transform_5(%arg0: i32) -> (i32, i32) {
    %c0_i32 = arith.constant 0 : i32
    %c0_i32_0 = arith.constant 0 : i32
    %c0_i32_1 = arith.constant 0 : i32
    return %c0_i32, %c0_i32_0 : i32, i32
  }
}

</mosaic_0001>

<bundles_post_ra>
// kernel: tpu_custom_call.1
= control target key start
LH: loop header
LB: loop body
LE: loop exit
PB: predicated region body
PF: predicated region fallthrough
CT: control target
= control target key end

     0   :  { %s2854_s0 = inlined_call_operand.vmem [shape: bf16[256,32], index: 0, kind: input, shape index: {}]   ;;  %s2855_s1 = inlined_call_operand.vmem [shape: bf16[32,128], index: 1, kind: input, shape index: {}]   ;;  %s2856_s2 = inlined_call_operand.vmem [shape: bf16[128,128], index: 2, kind: input, shape index: {}]   ;;  %s2857_s3 = inlined_call_operand.vmem [shape: bf16[128,128], index: 3, kind: input, shape index: {}]   ;;  %s2858_s4 = inlined_call_operand.vmem [shape: f32[8,128], index: 4, kind: input, shape index: {}]   ;;  %s2859_s5 = inlined_call_operand.hbm [shape: f32[256,128], index: 5, kind: output, shape index: {}]  }
   0x1   :  { %v1811_v0 = vld [vmem:[%s2855_s1 + $0x8] sm:$0xff] }
   0x2   :  { %10 = vsyncpa [#allocation3], 0  ;;  %206 = vmatpush.bf16.msra.mxu0 %v1811_v0  ;;  %v1810_v1 = vld [vmem:[%s2855_s1] sm:$0xff]  ;;  %1828 = vmatpush.bf16.msra.mxu3 %v1811_v0  ;;  %vm151_vm0 = vcmask 261120   ;;  %v1795_v3 = vld [vmem:[%s2854_s0 + $0x8] sm:$0xff]  ;;  %s1630_s18 = sshll.u32 %s2859_s5, 4  ;;  %s1631_s18 = int_to_ptr.hbm [resolvable:$true] %s1630_s18 }
   0x3   :  { %v1794_v2 = vld [vmem:[%s2854_s0] sm:$0xff]  ;;  %v1796_v4 = vld [vmem:[%s2854_s0 + $0x10] sm:$0xff]  ;;  %v1797_v5 = vld [vmem:[%s2854_s0 + $0x18] sm:$0xff]  ;;  %s1882_s19 = smov 128   ;;  %s1883_s20 = smov 8  }
   0x4   :  { %v1798_v6 = vld [vmem:[%s2854_s0 + $0x20] sm:$0xff]  ;;  %v1799_v7 = vld [vmem:[%s2854_s0 + $0x28] sm:$0xff]  ;;  %v1800_v8 = vld [vmem:[%s2854_s0 + $0x30] sm:$0xff] }
   0x5   :  { %v1801_v9 = vld [vmem:[%s2854_s0 + $0x38] sm:$0xff]  ;;  %v1802_v10 = vld [vmem:[%s2854_s0 + $0x40] sm:$0xff]  ;;  %v1807_v11 = vld [vmem:[%s2854_s0 + $0x68] sm:$0xff] }
   0x6   :  { %207 = vmatpush.bf16.msra.mxu0 %v1810_v1  ;;  %1829 = vmatpush.bf16.msra.mxu3 %v1810_v1  ;;  %v1803_v14 = vld [vmem:[%s2854_s0 + $0x48] sm:$0xff]  ;;  %v1808_v15 = vld [vmem:[%s2854_s0 + $0x70] sm:$0xff]  ;;  %v1809_v19 = vld [vmem:[%s2854_s0 + $0x78] sm:$0xff] }
   0x7   :  { %v1804_v18 = vld [vmem:[%s2854_s0 + $0x50] sm:$0xff]  ;;  %v1805_v22 = vld [vmem:[%s2854_s0 + $0x58] sm:$0xff]  ;;  %v1806_v25 = vld [vmem:[%s2854_s0 + $0x60] sm:$0xff] }
   0x9   :  { %1714 = vmatmul.msk.bf16.vlgmr.msra.gmra.mxu0 %vm151_vm0, %v1794_v2  ;;  %1727 = vmatmul.msk.bf16.vlgmr.msra.gmra.mxu3 %vm151_vm0, %v1807_v11 }
  0x19   :  { %1715 = vmatmul.msk.bf16.gmra.mxu0 %vm151_vm0, %v1795_v3  ;;  %1728 = vmatmul.msk.bf16.gmra.mxu3 %vm151_vm0, %v1808_v15  ;;  %v1819_v15 = vld [vmem:[%s2856_s2 + $0x38] sm:$0xff] }
  0x1a   :  { %698 = vmatpush.bf16.msra.mxu1 %v1819_v15  ;;  %1830 = vmatpush.bf16.msrb.mxu3 %v1819_v15 }
  0x29   :  { %1716 = vmatmul.msk.bf16.gmra.mxu0 %vm151_vm0, %v1796_v4  ;;  %1729 = vmatmul.msk.bf16.gmra.mxu3 %vm151_vm0, %v1809_v19  ;;  %v1818_v19 = vld [vmem:[%s2856_s2 + $0x30] sm:$0xff] }
  0x2a   :  { %699 = vmatpush.bf16.msra.mxu1 %v1818_v19  ;;  %1831 = vmatpush.bf16.msrb.mxu3 %v1818_v19 }
  0x39   :  { %1717 = vmatmul.msk.bf16.gmra.mxu0 %vm151_vm0, %v1797_v5 }
  0x49   :  { %1718 = vmatmul.msk.bf16.gmra.mxu0 %vm151_vm0, %v1798_v6 }
  0x59   :  { %1719 = vmatmul.msk.bf16.gmra.mxu0 %vm151_vm0, %v1799_v7 }
  0x69   :  { %1720 = vmatmul.msk.bf16.gmra.mxu0 %vm151_vm0, %v1800_v8 }
  0x79   :  { %1721 = vmatmul.msk.bf16.gmra.mxu0 %vm151_vm0, %v1801_v9 }
  0x86   :  { %v1958_v12 = vpop.f32.mrf.mxu0 }
  0x89   :  { %1722 = vmatmul.msk.bf16.gmra.mxu0 %vm151_vm0, %v1802_v10 }
  0x8c   :  { %v2032_v44 = vpop.f32.mrf.mxu3 }
  0x8e   :  { %v1962_v13 = vpop.f32.mrf.mxu0 }
  0x8f   :  { %v364_v38 = vadd.f32 %v1962_v13, %v1958_v12 }
  0x94   :  { %v2041_v51 = vpop.f32.mrf.mxu3 }
  0x96   :  { %v1970_v16 = vpop.f32.mrf.mxu0 }
  0x97   :  { %v365_v39 = vadd.f32 %v364_v38, %v1970_v16 }
  0x99   :  { %1723 = vmatmul.msk.bf16.gmra.mxu0 %vm151_vm0, %v1803_v14 }
  0x9c   :  { %v2050_v58 = vpop.f32.mrf.mxu3 }
  0x9e   :  { %v1974_v17 = vpop.f32.mrf.mxu0 }
  0x9f   :  { %v366_v40 = vadd.f32 %v365_v39, %v1974_v17  ;;  %v1817_v39 = vld [vmem:[%s2856_s2 + $0x28] sm:$0xff] }
  0xa0   :  { %700 = vmatpush.bf16.msra.mxu1 %v1817_v39  ;;  %1832 = vmatpush.bf16.msrb.mxu3 %v1817_v39 }
  0xa4   :  { %v2059_v1 = vpop.f32.mrf.mxu3 }
  0xa6   :  { %v1982_v20 = vpop.f32.mrf.mxu0 }
  0xa7   :  { %v367_v41 = vadd.f32 %v366_v40, %v1982_v20 }
  0xa9   :  { %1724 = vmatmul.msk.bf16.gmra.mxu0 %vm151_vm0, %v1804_v18 }
  0xac   :  { %v2070_v9 = vpop.f32.mrf.mxu3 }
  0xae   :  { %v1986_v21 = vpop.f32.mrf.mxu0 }
  0xaf   :  { %v368_v43 = vadd.f32 %v367_v41, %v1986_v21 }
  0xb6   :  { %v1991_v23 = vpop.f32.mrf.mxu0 }
  0xb7   :  { %v369_v45 = vadd.f32 %v368_v43, %v1991_v23  ;;  %v1816_v43 = vld [vmem:[%s2856_s2 + $0x20] sm:$0xff] }
  0xb8   :  { %701 = vmatpush.bf16.msra.mxu1 %v1816_v43  ;;  %1833 = vmatpush.bf16.msrb.mxu3 %v1816_v43 }
  0xb9   :  { %1725 = vmatmul.msk.bf16.gmra.mxu0 %vm151_vm0, %v1805_v22 }
  0xbe   :  { %v1994_v24 = vpop.f32.mrf.mxu0 }
  0xbf   :  { %v370_v46 = vadd.f32 %v369_v45, %v1994_v24 }
  0xc6   :  { %v1999_v26 = vpop.f32.mrf.mxu0 }
  0xc7   :  { %v371_v47 = vadd.f32 %v370_v46, %v1999_v26  ;;  %v1815_v46 = vld [vmem:[%s2856_s2 + $0x18] sm:$0xff] }
  0xc8   :  { %702 = vmatpush.bf16.msra.mxu1 %v1815_v46  ;;  %1834 = vmatpush.bf16.msrb.mxu3 %v1815_v46 }
  0xc9   :  { %1726 = vmatmul.msk.bf16.gmra.mxu0 %vm151_vm0, %v1806_v25  ;;  %v2083_v25 = vpop.f32.mrf.mxu3 }
  0xce   :  { %v2002_v27 = vpop.f32.mrf.mxu0 }
  0xcf   :  { %v372_v49 = vadd.f32 %v371_v47, %v2002_v27 }
  0xd6   :  { %v2004_v28 = vpop.f32.mrf.mxu0 }
  0xd7   :  { %v373_v50 = vadd.f32 %v372_v49, %v2004_v28  ;;  %v1814_v49 = vld [vmem:[%s2856_s2 + $0x10] sm:$0xff] }
  0xd8   :  { %703 = vmatpush.bf16.msra.mxu1 %v1814_v49  ;;  %1835 = vmatpush.bf16.msrb.mxu3 %v1814_v49 }
  0xde   :  { %v2006_v29 = vpop.f32.mrf.mxu0 }
  0xdf   :  { %v374_v52 = vadd.f32 %v373_v50, %v2006_v29 }
  0xe6   :  { %v2008_v30 = vpop.f32.mrf.mxu0 }
  0xe7   :  { %v375_v53 = vadd.f32 %v374_v52, %v2008_v30  ;;  %v1813_v52 = vld [vmem:[%s2856_s2 + $0x8] sm:$0xff] }
  0xe8   :  { %704 = vmatpush.bf16.msra.mxu1 %v1813_v52  ;;  %1836 = vmatpush.bf16.msrb.mxu3 %v1813_v52 }
  0xee   :  { %v2010_v31 = vpop.f32.mrf.mxu0 }
  0xef   :  { %v376_v55 = vadd.f32 %v375_v53, %v2010_v31 }
  0xf6   :  { %v2012_v32 = vpop.f32.mrf.mxu0 }
  0xf7   :  { %v377_v56 = vadd.f32 %v376_v55, %v2012_v32  ;;  %v1812_v55 = vld [vmem:[%s2856_s2] sm:$0xff] }
  0xf8   :  { %705 = vmatpush.bf16.msra.mxu1 %v1812_v55  ;;  %1837 = vmatpush.bf16.msrb.mxu3 %v1812_v55 }
  0xfe   :  { %v2014_v33 = vpop.f32.mrf.mxu0 }
  0xff   :  { %v378_v57 = vadd.f32 %v377_v56, %v2014_v33 }
 0x106   :  { %v2016_v34 = vpop.f32.mrf.mxu0 }
 0x107   :  { %v379_v59 = vadd.f32 %v378_v57, %v2016_v34 }
 0x10e   :  { %v2018_v35 = vpop.f32.mrf.mxu0 }
 0x10f   :  { %v380_v61 = vadd.f32 %v379_v59, %v2018_v35 }
 0x116   :  { %v2020_v36 = vpop.f32.mrf.mxu0 }
 0x117   :  { %v381_v62 = vadd.f32 %v380_v61, %v2020_v36 }
 0x11e   :  { %v2022_v37 = vpop.f32.mrf.mxu0 }
 0x11f   :  { %v382_v63 = vadd.f32 %v381_v62, %v2022_v37 }
 0x126   :  { %v2029_v42 = vpop.f32.mrf.mxu0 }
 0x127   :  { %v383_v0 = vadd.f32 %v382_v63, %v2029_v42 }
 0x12e   :  { %v2037_v48 = vpop.f32.mrf.mxu0 }
 0x12f   :  { %v384_v3 = vadd.f32 %v383_v0, %v2037_v48 }
 0x136   :  { %v2045_v54 = vpop.f32.mrf.mxu0 }
 0x137   :  { %v385_v4 = vadd.f32 %v384_v3, %v2045_v54 }
 0x13e   :  { %v2053_v60 = vpop.f32.mrf.mxu0 }
 0x13f   :  { %v386_v5 = vadd.f32 %v385_v4, %v2053_v60 }
 0x146   :  { %v2061_v2 = vpop.f32.mrf.mxu0 }
 0x147   :  { %v387_v6 = vadd.f32 %v386_v5, %v2061_v2 }
 0x14e   :  { %v2067_v7 = vpop.f32.mrf.mxu0 }
 0x14f   :  { %v388_v8 = vadd.f32 %v387_v6, %v2067_v7 }
 0x151   :  { %v389_v10 = vadd.f32 %v388_v8, %v2032_v44 }
 0x153   :  { %v390_v11 = vadd.f32 %v389_v10, %v2041_v51 }
 0x155   :  { %v391_v14 = vadd.f32 %v390_v11, %v2050_v58 }
 0x157   :  { %v392_v18 = vadd.f32 %v391_v14, %v2059_v1 }
 0x159   :  { %v393_v22 = vadd.f32 %v392_v18, %v2070_v9 }
 0x15b   :  { %v394_v38 = vadd.f32 %v393_v22, %v2083_v25 }
 0x15d   :  { %v395_v40 = vrot.slane %v394_v38, 4 }
 0x15f   :  { %v396_v41 = vadd.f32 %v395_v40, %v394_v38 }
 0x161   :  { %v397_v45 = vrot.slane %v396_v41, 2 }
 0x163   :  { %v398_v47 = vadd.f32 %v397_v45, %v396_v41 }
 0x165   :  { %v399_v50 = vrot.slane %v398_v47, 1 }
 0x167   :  { %v400_v53 = vadd.f32 %v399_v50, %v398_v47 }
 0x169   :  { %v2104_v56 = vmul.f32 0.00390625, %v400_v53 }
 0x16b   :  { %v403_v57 = vsub.f32 %v1958_v12, %v2104_v56  ;;  %v404_v59 = vsub.f32 %v1962_v13, %v2104_v56  ;;  %v405_v61 = vsub.f32 %v1970_v16, %v2104_v56  ;;  %v406_v0 = vsub.f32 %v1974_v17, %v2104_v56 }
 0x16c   :  { %v407_v3 = vsub.f32 %v1982_v20, %v2104_v56  ;;  %v408_v6 = vsub.f32 %v1986_v21, %v2104_v56  ;;  %v409_v11 = vsub.f32 %v1991_v23, %v2104_v56  ;;  %v410_v18 = vsub.f32 %v1994_v24, %v2104_v56 }
 0x16d   :  { %v435_v62 = vmul.f32 %v403_v57, %v403_v57  ;;  %v436_v63 = vmul.f32 %v404_v59, %v404_v59  ;;  %v437_v4 = vmul.f32 %v405_v61, %v405_v61  ;;  %v438_v8 = vmul.f32 %v406_v0, %v406_v0 }
 0x16e   :  { %v439_v14 = vmul.f32 %v407_v3, %v407_v3  ;;  %v440_v19 = vmul.f32 %v408_v6, %v408_v6  ;;  %v411_v38 = vsub.f32 %v1999_v26, %v2104_v56  ;;  %v441_v39 = vmul.f32 %v409_v11, %v409_v11 }
 0x16f   :  { %v467_v5 = vadd.f32 %v436_v63, %v435_v62  ;;  %v412_v41 = vsub.f32 %v2002_v27, %v2104_v56  ;;  %v442_v43 = vmul.f32 %v410_v18, %v410_v18  ;;  %v413_v46 = vsub.f32 %v2004_v28, %v2104_v56 }
 0x170   :  { %v443_v47 = vmul.f32 %v411_v38, %v411_v38  ;;  %v414_v50 = vsub.f32 %v2006_v29, %v2104_v56  ;;  %v415_v55 = vsub.f32 %v2008_v30, %v2104_v56  ;;  %v416_v61 = vsub.f32 %v2010_v31, %v2104_v56 }
 0x171   :  { %v468_v10 = vadd.f32 %v467_v5, %v437_v4  ;;  %v444_v52 = vmul.f32 %v412_v41, %v412_v41  ;;  %v445_v57 = vmul.f32 %v413_v46, %v413_v46  ;;  %v417_v0 = vsub.f32 %v2012_v32, %v2104_v56 }
 0x172   :  { %v446_v62 = vmul.f32 %v414_v50, %v414_v50  ;;  %v447_v3 = vmul.f32 %v415_v55, %v415_v55  ;;  %v418_v5 = vsub.f32 %v2014_v33, %v2104_v56  ;;  %v448_v6 = vmul.f32 %v416_v61, %v416_v61 }
 0x173   :  { %v469_v15 = vadd.f32 %v468_v10, %v438_v8  ;;  %v419_v10 = vsub.f32 %v2016_v34, %v2104_v56  ;;  %v449_v11 = vmul.f32 %v417_v0, %v417_v0 }
 0x174   :  { %v450_v18 = vmul.f32 %v418_v5, %v418_v5 }
 0x175   :  { %v470_v22 = vadd.f32 %v469_v15, %v439_v14  ;;  %v420_v15 = vsub.f32 %v2018_v35, %v2104_v56  ;;  %v451_v38 = vmul.f32 %v419_v10, %v419_v10 }
 0x177   :  { %v471_v40 = vadd.f32 %v470_v22, %v440_v19  ;;  %v421_v22 = vsub.f32 %v2020_v36, %v2104_v56  ;;  %v452_v41 = vmul.f32 %v420_v15, %v420_v15 }
 0x179   :  { %v472_v45 = vadd.f32 %v471_v40, %v441_v39  ;;  %v422_v40 = vsub.f32 %v2022_v37, %v2104_v56  ;;  %v453_v46 = vmul.f32 %v421_v22, %v421_v22 }
 0x17b   :  { %v473_v49 = vadd.f32 %v472_v45, %v442_v43  ;;  %v423_v45 = vsub.f32 %v2029_v42, %v2104_v56  ;;  %v454_v50 = vmul.f32 %v422_v40, %v422_v40 }
 0x17d   :  { %v474_v53 = vadd.f32 %v473_v49, %v443_v47  ;;  %v424_v49 = vsub.f32 %v2037_v48, %v2104_v56  ;;  %v455_v55 = vmul.f32 %v423_v45, %v423_v45 }
 0x17f   :  { %v475_v59 = vadd.f32 %v474_v53, %v444_v52  ;;  %v425_v53 = vsub.f32 %v2045_v54, %v2104_v56  ;;  %v456_v61 = vmul.f32 %v424_v49, %v424_v49 }
 0x181   :  { %v476_v63 = vadd.f32 %v475_v59, %v445_v57  ;;  %v426_v59 = vsub.f32 %v2053_v60, %v2104_v56  ;;  %v457_v0 = vmul.f32 %v425_v53, %v425_v53 }
 0x183   :  { %v477_v4 = vadd.f32 %v476_v63, %v446_v62  ;;  %v427_v63 = vsub.f32 %v2061_v2, %v2104_v56  ;;  %v458_v5 = vmul.f32 %v426_v59, %v426_v59 }
 0x185   :  { %v478_v8 = vadd.f32 %v477_v4, %v447_v3  ;;  %v428_v4 = vsub.f32 %v2067_v7, %v2104_v56  ;;  %v459_v10 = vmul.f32 %v427_v63, %v427_v63 }
 0x187   :  { %v479_v14 = vadd.f32 %v478_v8, %v448_v6  ;;  %v429_v8 = vsub.f32 %v2032_v44, %v2104_v56  ;;  %v460_v15 = vmul.f32 %v428_v4, %v428_v4 }
 0x189   :  { %v480_v19 = vadd.f32 %v479_v14, %v449_v11  ;;  %v430_v14 = vsub.f32 %v2041_v51, %v2104_v56  ;;  %v461_v22 = vmul.f32 %v429_v8, %v429_v8 }
 0x18b   :  { %v481_v39 = vadd.f32 %v480_v19, %v450_v18  ;;  %v431_v19 = vsub.f32 %v2050_v58, %v2104_v56  ;;  %v462_v40 = vmul.f32 %v430_v14, %v430_v14 }
 0x18d   :  { %v482_v43 = vadd.f32 %v481_v39, %v451_v38  ;;  %v432_v39 = vsub.f32 %v2059_v1, %v2104_v56  ;;  %v463_v45 = vmul.f32 %v431_v19, %v431_v19 }
 0x18f   :  { %v483_v47 = vadd.f32 %v482_v43, %v452_v41  ;;  %v433_v43 = vsub.f32 %v2070_v9, %v2104_v56  ;;  %v464_v49 = vmul.f32 %v432_v39, %v432_v39  ;;  %v327_v39 = vld [vmem:[%s2858_s4 + $0x1] sm:$0x1] }
 0x191   :  { %v484_v52 = vadd.f32 %v483_v47, %v453_v46  ;;  %v434_v47 = vsub.f32 %v2083_v25, %v2104_v56 }
 0x193   :  { %v485_v57 = vadd.f32 %v484_v52, %v454_v50  ;;  %v465_v52 = vmul.f32 %v433_v43, %v433_v43 }
 0x195   :  { %v486_v62 = vadd.f32 %v485_v57, %v455_v55  ;;  %v466_v55 = vmul.f32 %v434_v47, %v434_v47 }
 0x197   :  { %v487_v3 = vadd.f32 %v486_v62, %v456_v61 }
 0x199   :  { %v488_v6 = vadd.f32 %v487_v3, %v457_v0 }
 0x19b   :  { %v489_v11 = vadd.f32 %v488_v6, %v458_v5 }
 0x19d   :  { %v490_v18 = vadd.f32 %v489_v11, %v459_v10 }
 0x19f   :  { %v491_v38 = vadd.f32 %v490_v18, %v460_v15  ;;  %v326_v18 = vld [vmem:[%s2858_s4] sm:$0x1] }
 0x1a1   :  { %v492_v41 = vadd.f32 %v491_v38, %v461_v22 }
 0x1a3   :  { %v493_v46 = vadd.f32 %v492_v41, %v462_v40 }
 0x1a5   :  { %v494_v50 = vadd.f32 %v493_v46, %v463_v45 }
 0x1a7   :  { %v495_v53 = vadd.f32 %v494_v50, %v464_v49 }
 0x1a9   :  { %v496_v57 = vadd.f32 %v495_v53, %v465_v52 }
 0x1ab   :  { %v497_v59 = vadd.f32 %v496_v57, %v466_v55 }
 0x1ad   :  { %v498_v61 = vrot.slane %v497_v59, 4 }
 0x1af   :  { %v499_v62 = vadd.f32 %v498_v61, %v497_v59 }
 0x1b1   :  { %v500_v63 = vrot.slane %v499_v62, 2 }
 0x1b3   :  { %v501_v0 = vadd.f32 %v500_v63, %v499_v62 }
 0x1b5   :  { %v502_v3 = vrot.slane %v501_v0, 1 }
 0x1b7   :  { %v503_v4 = vadd.f32 %v502_v3, %v501_v0 }
 0x1b9   :  { %v505_v5 = vmul.f32 0.00390625, %v503_v4 }
 0x1bb   :  { %v506_v6 = vadd.f32 1e-05, %v505_v5 }
 0x1bd   :  { %1849 = vrsqrt.f32 %v506_v6  ;;  %vm513_vm2 = vweird.f32 %v506_v6 }
 0x1c3   :  { %v1850_v8 = vpop.eup %1849 }
 0x1c4   :  { %v508_v10 = vmul.f32 %v1850_v8, %v506_v6  ;;  %vm514_vm1 = vweird.f32 %v1850_v8 }
 0x1c5   :  { %vm515_vm3 = vmor %vm513_vm2, %vm514_vm1 }
 0x1c6   :  { %v509_v11 = vmul.f32 %v1850_v8, %v508_v10 }
 0x1c8   :  { %v510_v14 = vmul.f32 0.5, %v509_v11 }
 0x1ca   :  { %v511_v15 = vsub.f32 1.5, %v510_v14 }
 0x1cc   :  { %v512_v19 = vmul.f32 %v1850_v8, %v511_v15 }
 0x1ce   :  { %v516_v22 = vsel %vm515_vm3, %v1850_v8, %v512_v19 }
 0x1cf   :  { %v517_v38 = vmul.f32 %v516_v22, %v326_v18 }
 0x1d1   :  { %v518_v40 = vmul.f32 %v517_v38, %v2104_v56  ;;  %v2177_v41 = vperm.slane %v517_v38, 0 }
 0x1d3   :  { %v519_v43 = vsub.f32 %v327_v39, %v518_v40  ;;  %v521_v45 = vmul.f32 %v2177_v41, %v1958_v12  ;;  %v522_v46 = vmul.f32 %v2177_v41, %v1962_v13  ;;  %v545_v49 = vmul.f32 %v2177_v41, %v2061_v2 }
 0x1d4   :  { %v546_v50 = vmul.f32 %v2177_v41, %v2067_v7  ;;  %v523_v12 = vmul.f32 %v2177_v41, %v1970_v16  ;;  %v524_v13 = vmul.f32 %v2177_v41, %v1974_v17  ;;  %v547_v63 = vmul.f32 %v2177_v41, %v2032_v44 }
 0x1d5   :  { %v2183_v47 = vperm.slane %v519_v43, 0  ;;  %v548_v0 = vmul.f32 %v2177_v41, %v2041_v51  ;;  %v529_v8 = vmul.f32 %v2177_v41, %v1999_v26  ;;  %v530_v44 = vmul.f32 %v2177_v41, %v2002_v27 }
 0x1d6   :  { %v531_v14 = vmul.f32 %v2177_v41, %v2004_v28  ;;  %v532_v15 = vmul.f32 %v2177_v41, %v2006_v29  ;;  %v533_v22 = vmul.f32 %v2177_v41, %v2008_v30  ;;  %v534_v27 = vmul.f32 %v2177_v41, %v2010_v31 }
 0x1d7   :  { %v554_v52 = vadd.f32 %v2183_v47, %v521_v45  ;;  %v555_v56 = vadd.f32 %v2183_v47, %v522_v46  ;;  %v578_v53 = vadd.f32 %v2183_v47, %v545_v49  ;;  %v579_v55 = vadd.f32 %v2183_v47, %v546_v50 }
 0x1d8   :  { %v556_v7 = vadd.f32 %v2183_v47, %v523_v12  ;;  %v557_v62 = vadd.f32 %v2183_v47, %v524_v13  ;;  %v580_v16 = vadd.f32 %v2183_v47, %v547_v63  ;;  %v581_v17 = vadd.f32 %v2183_v47, %v548_v0 }
 0x1d9   :  { %v586_v57 = vmax.f32 %v554_v52, 0.0  ;;  %v587_v59 = vmax.f32 %v555_v56, 0.0  ;;  %v610_v2 = vmax.f32 %v578_v53, 0.0  ;;  %v611_v61 = vmax.f32 %v579_v55, 0.0 }
 0x1da   :  { %v588_v5 = vmax.f32 %v556_v7, 0.0  ;;  %v589_v6 = vmax.f32 %v557_v62, 0.0  ;;  %v612_v10 = vmax.f32 %v580_v16, 0.0  ;;  %v613_v11 = vmax.f32 %v581_v17, 0.0 }
 0x1db   :  { %v618_v3 = vpack.c.bf16 %v587_v59, %v586_v57  ;;  %v630_v4 = vpack.c.bf16 %v611_v61, %v610_v2  ;;  %v562_v51 = vadd.f32 %v2183_v47, %v529_v8  ;;  %v563_v19 = vadd.f32 %v2183_v47, %v530_v44 }
 0x1dc   :  { %v619_v18 = vpack.c.bf16 %v589_v6, %v588_v5  ;;  %v564_v38 = vadd.f32 %v2183_v47, %v531_v14  ;;  %v565_v39 = vadd.f32 %v2183_v47, %v532_v15  ;;  %v631_v40 = vpack.c.bf16 %v613_v11, %v612_v10 }
 0x1dd   :  { %706 = vmatmul.bf16.vlgmr.msra.gmra.mxu1 %v618_v3  ;;  %766 = vmatmul.bf16.vlgmr.msrb.gmra.mxu3 %v630_v4  ;;  %v594_v26 = vmax.f32 %v562_v51, 0.0  ;;  %v595_v43 = vmax.f32 %v563_v19, 0.0  ;;  %v566_v28 = vadd.f32 %v2183_v47, %v533_v22  ;;  %v535_v29 = vmul.f32 %v2177_v41, %v2012_v32 }
 0x1de   :  { %v596_v45 = vmax.f32 %v564_v38, 0.0  ;;  %v597_v46 = vmax.f32 %v565_v39, 0.0  ;;  %v567_v49 = vadd.f32 %v2183_v47, %v534_v27  ;;  %v536_v30 = vmul.f32 %v2177_v41, %v2014_v33 }
 0x1df   :  { %v2227_v50 = vpack.c.bf16 %v595_v43, %v594_v26  ;;  %v598_v52 = vmax.f32 %v566_v28, 0.0  ;;  %v568_v56 = vadd.f32 %v2183_v47, %v535_v29  ;;  %v537_v31 = vmul.f32 %v2177_v41, %v2016_v34 }
 0x1e0   :  { %v2232_v53 = vpack.c.bf16 %v597_v46, %v596_v45  ;;  %v599_v55 = vmax.f32 %v567_v49, 0.0  ;;  %v569_v32 = vadd.f32 %v2183_v47, %v536_v30  ;;  %v538_v12 = vmul.f32 %v2177_v41, %v2018_v35 }
 0x1e1   :  { %v600_v13 = vmax.f32 %v568_v56, 0.0  ;;  %v570_v57 = vadd.f32 %v2183_v47, %v537_v31  ;;  %v539_v33 = vmul.f32 %v2177_v41, %v2020_v36  ;;  %v540_v59 = vmul.f32 %v2177_v41, %v2022_v37 }
 0x1e2   :  { %v624_v2 = vpack.c.bf16 %v599_v55, %v598_v52  ;;  %v601_v61 = vmax.f32 %v569_v32, 0.0  ;;  %v571_v34 = vadd.f32 %v2183_v47, %v538_v12  ;;  %v541_v7 = vmul.f32 %v2177_v41, %v2029_v42 }
 0x1e3   :  { %v602_v62 = vmax.f32 %v570_v57, 0.0  ;;  %v572_v63 = vadd.f32 %v2183_v47, %v539_v33  ;;  %v573_v35 = vadd.f32 %v2183_v47, %v540_v59  ;;  %v542_v0 = vmul.f32 %v2177_v41, %v2037_v48 }
 0x1e4   :  { %v625_v3 = vpack.c.bf16 %v601_v61, %v600_v13  ;;  %v603_v36 = vmax.f32 %v571_v34, 0.0  ;;  %v574_v4 = vadd.f32 %v2183_v47, %v541_v7  ;;  %v543_v37 = vmul.f32 %v2177_v41, %v2045_v54 }
 0x1e5   :  { %v604_v16 = vmax.f32 %v572_v63, 0.0  ;;  %v605_v17 = vmax.f32 %v573_v35, 0.0  ;;  %v575_v5 = vadd.f32 %v2183_v47, %v542_v0  ;;  %v544_v42 = vmul.f32 %v2177_v41, %v2053_v60 }
 0x1e6   :  { %v626_v6 = vpack.c.bf16 %v603_v36, %v602_v62  ;;  %v606_v8 = vmax.f32 %v574_v4, 0.0  ;;  %v576_v48 = vadd.f32 %v2183_v47, %v543_v37  ;;  %v525_v15 = vmul.f32 %v2177_v41, %v1982_v20 }
 0x1e7   :  { %v627_v10 = vpack.c.bf16 %v605_v17, %v604_v16  ;;  %v607_v11 = vmax.f32 %v575_v5, 0.0  ;;  %v577_v44 = vadd.f32 %v2183_v47, %v544_v42  ;;  %v526_v19 = vmul.f32 %v2177_v41, %v1986_v21 }
 0x1e8   :  { %v608_v51 = vmax.f32 %v576_v48, 0.0  ;;  %v549_v60 = vmul.f32 %v2177_v41, %v2050_v58  ;;  %v558_v26 = vadd.f32 %v2183_v47, %v525_v15  ;;  %v527_v58 = vmul.f32 %v2177_v41, %v1991_v23 }
 0x1e9   :  { %v628_v14 = vpack.c.bf16 %v607_v11, %v606_v8  ;;  %v609_v54 = vmax.f32 %v577_v44, 0.0  ;;  %v559_v38 = vadd.f32 %v2183_v47, %v526_v19  ;;  %v551_v45 = vmul.f32 %v2177_v41, %v2070_v9 }
 0x1ea   :  { %v582_v39 = vadd.f32 %v2183_v47, %v549_v60  ;;  %v552_v46 = vmul.f32 %v2177_v41, %v2083_v25  ;;  %v560_v49 = vadd.f32 %v2183_v47, %v527_v58 }
 0x1eb   :  { %v629_v22 = vpack.c.bf16 %v609_v54, %v608_v51  ;;  %v591_v20 = vmax.f32 %v559_v38, 0.0  ;;  %v584_v52 = vadd.f32 %v2183_v47, %v551_v45 }
 0x1ec   :  { %v614_v43 = vmax.f32 %v582_v39, 0.0  ;;  %v585_v56 = vadd.f32 %v2183_v47, %v552_v46  ;;  %v592_v31 = vmax.f32 %v560_v49, 0.0 }
 0x1ed   :  { %711 = vmatmul.bf16.gmra.mxu1 %v619_v18  ;;  %771 = vmatmul.bf16.gmra.mxu3 %v631_v40  ;;  %v550_v18 = vmul.f32 %v2177_v41, %v2059_v1  ;;  %v590_v40 = vmax.f32 %v558_v26, 0.0  ;;  %v528_v1 = vmul.f32 %v2177_v41, %v1994_v24  ;;  %v616_v23 = vmax.f32 %v584_v52, 0.0 }
 0x1ee   :  { %v617_v32 = vmax.f32 %v585_v56, 0.0 }
 0x1ef   :  { %v583_v27 = vadd.f32 %v2183_v47, %v550_v18  ;;  %v620_v21 = vpack.c.bf16 %v591_v20, %v590_v40  ;;  %v561_v30 = vadd.f32 %v2183_v47, %v528_v1 }
 0x1f0   :  { %v633_v24 = vpack.c.bf16 %v617_v32, %v616_v23  ;;  %v1826_v32 = vld [vmem:[%s2857_s3 + $0x30] sm:$0xff] }
 0x1f1   :  { %v615_v28 = vmax.f32 %v583_v27, 0.0  ;;  %v593_v55 = vmax.f32 %v561_v30, 0.0 }
 0x1f3   :  { %v632_v29 = vpack.c.bf16 %v615_v28, %v614_v43  ;;  %v621_v12 = vpack.c.bf16 %v593_v55, %v592_v31  ;;  %v1827_v55 = vld [vmem:[%s2857_s3 + $0x38] sm:$0xff] }
 0x1f4   :  { %1185 = vmatpush.bf16.msra.mxu2 %v1827_v55  ;;  %1838 = vmatpush.bf16.msra.mxu3 %v1827_v55 }
 0x1f8   :  { %1186 = vmatpush.bf16.msra.mxu2 %v1826_v32  ;;  %1839 = vmatpush.bf16.msra.mxu3 %v1826_v32 }
 0x1fd   :  { %716 = vmatmul.bf16.gmra.mxu1 %v620_v21  ;;  %776 = vmatmul.bf16.gmra.mxu3 %v632_v29 }
 0x20d   :  { %721 = vmatmul.bf16.gmra.mxu1 %v621_v12  ;;  %781 = vmatmul.bf16.gmra.mxu3 %v633_v24 }
 0x21d   :  { %726 = vmatmul.bf16.gmra.mxu1 %v2227_v50 }
 0x22d   :  { %731 = vmatmul.bf16.gmra.mxu1 %v2232_v53 }
 0x23d   :  { %736 = vmatmul.bf16.gmra.mxu1 %v624_v2 }
 0x24d   :  { %741 = vmatmul.bf16.gmra.mxu1 %v625_v3 }
 0x25a   :  { %v2283_v9 = vpop.f32.mrf.mxu1 }
 0x25d   :  { %746 = vmatmul.bf16.gmra.mxu1 %v626_v6 }
 0x260   :  { %v2317_v0 = vpop.f32.mrf.mxu3 }
 0x262   :  { %v2285_v25 = vpop.f32.mrf.mxu1 }
 0x263   :  { %v851_v4 = vadd.f32 %v2285_v25, %v2283_v9 }
 0x268   :  { %v2321_v36 = vpop.f32.mrf.mxu3 }
 0x26a   :  { %v2287_v41 = vpop.f32.mrf.mxu1 }
 0x26b   :  { %v852_v37 = vadd.f32 %v851_v4, %v2287_v41 }
 0x26d   :  { %751 = vmatmul.bf16.gmra.mxu1 %v627_v10 }
 0x270   :  { %v2331_v6 = vpop.f32.mrf.mxu3 }
 0x272   :  { %v2289_v47 = vpop.f32.mrf.mxu1 }
 0x273   :  { %v853_v17 = vadd.f32 %v852_v37, %v2289_v47  ;;  %v1825_v37 = vld [vmem:[%s2857_s3 + $0x28] sm:$0xff] }
 0x274   :  { %1187 = vmatpush.bf16.msra.mxu2 %v1825_v37  ;;  %1840 = vmatpush.bf16.msra.mxu3 %v1825_v37 }
 0x27a   :  { %v2291_v13 = vpop.f32.mrf.mxu1 }
 0x27b   :  { %v854_v5 = vadd.f32 %v853_v17, %v2291_v13 }
 0x27d   :  { %756 = vmatmul.bf16.gmra.mxu1 %v628_v14  ;;  %v2340_v14 = vpop.f32.mrf.mxu3 }
 0x282   :  { %v2293_v57 = vpop.f32.mrf.mxu1 }
 0x283   :  { %v855_v42 = vadd.f32 %v854_v5, %v2293_v57 }
 0x285   :  { %v2351_v38 = vpop.f32.mrf.mxu3 }
 0x28a   :  { %v2295_v50 = vpop.f32.mrf.mxu1 }
 0x28b   :  { %v856_v8 = vadd.f32 %v855_v42, %v2295_v50  ;;  %v1824_v42 = vld [vmem:[%s2857_s3 + $0x20] sm:$0xff] }
 0x28c   :  { %1188 = vmatpush.bf16.msra.mxu2 %v1824_v42  ;;  %1841 = vmatpush.bf16.msra.mxu3 %v1824_v42 }
 0x28d   :  { %761 = vmatmul.bf16.gmra.mxu1 %v629_v22  ;;  %v2360_v21 = vpop.f32.mrf.mxu3 }
 0x292   :  { %v2297_v53 = vpop.f32.mrf.mxu1 }
 0x293   :  { %v857_v10 = vadd.f32 %v856_v8, %v2297_v53 }
 0x295   :  { %v2369_v30 = vpop.f32.mrf.mxu3 }
 0x29a   :  { %v2299_v33 = vpop.f32.mrf.mxu1 }
 0x29b   :  { %v858_v11 = vadd.f32 %v857_v10, %v2299_v33  ;;  %v1823_v10 = vld [vmem:[%s2857_s3 + $0x18] sm:$0xff] }
 0x29c   :  { %1189 = vmatpush.bf16.msra.mxu2 %v1823_v10  ;;  %1842 = vmatpush.bf16.msra.mxu3 %v1823_v10 }
 0x29d   :  { %v2382_v24 = vpop.f32.mrf.mxu3 }
 0x2a2   :  { %v2301_v59 = vpop.f32.mrf.mxu1 }
 0x2a3   :  { %v859_v44 = vadd.f32 %v858_v11, %v2301_v59 }
 0x2aa   :  { %v2303_v2 = vpop.f32.mrf.mxu1 }
 0x2ab   :  { %v860_v51 = vadd.f32 %v859_v44, %v2303_v2  ;;  %v1822_v44 = vld [vmem:[%s2857_s3 + $0x10] sm:$0xff] }
 0x2ac   :  { %1190 = vmatpush.bf16.msra.mxu2 %v1822_v44  ;;  %1843 = vmatpush.bf16.msra.mxu3 %v1822_v44 }
 0x2b2   :  { %v2305_v61 = vpop.f32.mrf.mxu1 }
 0x2b3   :  { %v861_v15 = vadd.f32 %v860_v51, %v2305_v61 }
 0x2ba   :  { %v2307_v34 = vpop.f32.mrf.mxu1 }
 0x2bb   :  { %v862_v19 = vadd.f32 %v861_v15, %v2307_v34  ;;  %v1821_v15 = vld [vmem:[%s2857_s3 + $0x8] sm:$0xff] }
 0x2bc   :  { %1191 = vmatpush.bf16.msra.mxu2 %v1821_v15  ;;  %1844 = vmatpush.bf16.msra.mxu3 %v1821_v15 }
 0x2c2   :  { %v2309_v7 = vpop.f32.mrf.mxu1 }
 0x2c3   :  { %v863_v60 = vadd.f32 %v862_v19, %v2309_v7 }
 0x2ca   :  { %v2311_v62 = vpop.f32.mrf.mxu1 }
 0x2cb   :  { %v864_v18 = vadd.f32 %v863_v60, %v2311_v62  ;;  %v1820_v60 = vld [vmem:[%s2857_s3] sm:$0xff] }
 0x2cc   :  { %1192 = vmatpush.bf16.msra.mxu2 %v1820_v60  ;;  %1845 = vmatpush.bf16.msra.mxu3 %v1820_v60 }
 0x2d2   :  { %v2313_v63 = vpop.f32.mrf.mxu1 }
 0x2d3   :  { %v865_v26 = vadd.f32 %v864_v18, %v2313_v63 }
 0x2da   :  { %v2315_v35 = vpop.f32.mrf.mxu1 }
 0x2db   :  { %v866_v39 = vadd.f32 %v865_v26, %v2315_v35 }
 0x2e2   :  { %v2319_v3 = vpop.f32.mrf.mxu1 }
 0x2e3   :  { %v867_v27 = vadd.f32 %v866_v39, %v2319_v3 }
 0x2ea   :  { %v2326_v16 = vpop.f32.mrf.mxu1 }
 0x2eb   :  { %v868_v40 = vadd.f32 %v867_v27, %v2326_v16 }
 0x2f2   :  { %v2334_v48 = vpop.f32.mrf.mxu1 }
 0x2f3   :  { %v869_v43 = vadd.f32 %v868_v40, %v2334_v48 }
 0x2fa   :  { %v2342_v54 = vpop.f32.mrf.mxu1 }
 0x2fb   :  { %v870_v28 = vadd.f32 %v869_v43, %v2342_v54 }
 0x302   :  { %v2348_v22 = vpop.f32.mrf.mxu1 }
 0x303   :  { %v871_v29 = vadd.f32 %v870_v28, %v2348_v22 }
 0x30a   :  { %v2356_v20 = vpop.f32.mrf.mxu1 }
 0x30b   :  { %v872_v58 = vadd.f32 %v871_v29, %v2356_v20 }
 0x312   :  { %v2364_v1 = vpop.f32.mrf.mxu1 }
 0x313   :  { %v873_v45 = vadd.f32 %v872_v58, %v2364_v1 }
 0x315   :  { %v874_v46 = vadd.f32 %v873_v45, %v2317_v0 }
 0x317   :  { %v875_v49 = vadd.f32 %v874_v46, %v2321_v36 }
 0x319   :  { %v876_v52 = vadd.f32 %v875_v49, %v2331_v6 }
 0x31b   :  { %v877_v56 = vadd.f32 %v876_v52, %v2340_v14 }
 0x31d   :  { %v878_v31 = vadd.f32 %v877_v56, %v2351_v38 }
 0x31f   :  { %v879_v23 = vadd.f32 %v878_v31, %v2360_v21 }
 0x321   :  { %v880_v12 = vadd.f32 %v879_v23, %v2369_v30 }
 0x323   :  { %v881_v4 = vadd.f32 %v880_v12, %v2382_v24 }
 0x325   :  { %v882_v17 = vrot.slane %v881_v4, 4 }
 0x327   :  { %v883_v5 = vadd.f32 %v882_v17, %v881_v4 }
 0x329   :  { %v884_v8 = vrot.slane %v883_v5, 2 }
 0x32b   :  { %v885_v11 = vadd.f32 %v884_v8, %v883_v5 }
 0x32d   :  { %v886_v51 = vrot.slane %v885_v11, 1 }
 0x32f   :  { %v887_v19 = vadd.f32 %v886_v51, %v885_v11 }
 0x331   :  { %v2403_v18 = vmul.f32 0.00390625, %v887_v19 }
 0x333   :  { %v890_v26 = vsub.f32 %v2283_v9, %v2403_v18  ;;  %v891_v39 = vsub.f32 %v2285_v25, %v2403_v18  ;;  %v892_v27 = vsub.f32 %v2287_v41, %v2403_v18  ;;  %v893_v28 = vsub.f32 %v2289_v47, %v2403_v18 }
 0x334   :  { %v894_v29 = vsub.f32 %v2291_v13, %v2403_v18  ;;  %v895_v46 = vsub.f32 %v2293_v57, %v2403_v18  ;;  %v896_v56 = vsub.f32 %v2295_v50, %v2403_v18  ;;  %v897_v23 = vsub.f32 %v2297_v53, %v2403_v18 }
 0x335   :  { %v922_v40 = vmul.f32 %v890_v26, %v890_v26  ;;  %v923_v43 = vmul.f32 %v891_v39, %v891_v39  ;;  %v924_v58 = vmul.f32 %v892_v27, %v892_v27  ;;  %v925_v49 = vmul.f32 %v893_v28, %v893_v28 }
 0x336   :  { %v926_v31 = vmul.f32 %v894_v29, %v894_v29  ;;  %v927_v32 = vmul.f32 %v895_v46, %v895_v46  ;;  %v898_v4 = vsub.f32 %v2299_v33, %v2403_v18  ;;  %v928_v37 = vmul.f32 %v896_v56, %v896_v56 }
 0x337   :  { %v954_v45 = vadd.f32 %v923_v43, %v922_v40  ;;  %v899_v5 = vsub.f32 %v2301_v59, %v2403_v18  ;;  %v929_v42 = vmul.f32 %v897_v23, %v897_v23  ;;  %v900_v10 = vsub.f32 %v2303_v2, %v2403_v18 }
 0x338   :  { %v930_v11 = vmul.f32 %v898_v4, %v898_v4  ;;  %v901_v51 = vsub.f32 %v2305_v61, %v2403_v18  ;;  %v902_v60 = vsub.f32 %v2307_v34, %v2403_v18  ;;  %v903_v27 = vsub.f32 %v2309_v7, %v2403_v18 }
 0x339   :  { %v955_v52 = vadd.f32 %v954_v45, %v924_v58  ;;  %v931_v15 = vmul.f32 %v899_v5, %v899_v5  ;;  %v932_v26 = vmul.f32 %v900_v10, %v900_v10  ;;  %v904_v28 = vsub.f32 %v2311_v62, %v2403_v18 }
 0x33a   :  { %v933_v40 = vmul.f32 %v901_v51, %v901_v51  ;;  %v934_v29 = vmul.f32 %v902_v60, %v902_v60  ;;  %v905_v45 = vsub.f32 %v2313_v63, %v2403_v18  ;;  %v935_v46 = vmul.f32 %v903_v27, %v903_v27 }
 0x33b   :  { %v956_v55 = vadd.f32 %v955_v52, %v925_v49  ;;  %v906_v52 = vsub.f32 %v2315_v35, %v2403_v18  ;;  %v936_v56 = vmul.f32 %v904_v28, %v904_v28 }
 0x33c   :  { %v937_v23 = vmul.f32 %v905_v45, %v905_v45  ;;  %v915_v45 = vsub.f32 %v2321_v36, %v2403_v18 }
 0x33d   :  { %v957_v12 = vadd.f32 %v956_v55, %v926_v31  ;;  %v907_v55 = vsub.f32 %v2319_v3, %v2403_v18  ;;  %v938_v4 = vmul.f32 %v906_v52, %v906_v52 }
 0x33f   :  { %v958_v17 = vadd.f32 %v957_v12, %v927_v32  ;;  %v908_v12 = vsub.f32 %v2326_v16, %v2403_v18  ;;  %v939_v5 = vmul.f32 %v907_v55, %v907_v55  ;;  %v947_v55 = vmul.f32 %v915_v45, %v915_v45 }
 0x341   :  { %v959_v8 = vadd.f32 %v958_v17, %v928_v37  ;;  %v909_v17 = vsub.f32 %v2334_v48, %v2403_v18  ;;  %v940_v10 = vmul.f32 %v908_v12, %v908_v12 }
 0x343   :  { %v960_v44 = vadd.f32 %v959_v8, %v929_v42  ;;  %v910_v8 = vsub.f32 %v2342_v54, %v2403_v18  ;;  %v941_v51 = vmul.f32 %v909_v17, %v909_v17 }
 0x345   :  { %v961_v19 = vadd.f32 %v960_v44, %v930_v11  ;;  %v911_v44 = vsub.f32 %v2348_v22, %v2403_v18  ;;  %v942_v60 = vmul.f32 %v910_v8, %v910_v8 }
 0x347   :  { %v962_v39 = vadd.f32 %v961_v19, %v931_v15  ;;  %v912_v19 = vsub.f32 %v2356_v20, %v2403_v18  ;;  %v943_v27 = vmul.f32 %v911_v44, %v911_v44 }
 0x349   :  { %v963_v43 = vadd.f32 %v962_v39, %v932_v26  ;;  %v913_v39 = vsub.f32 %v2364_v1, %v2403_v18  ;;  %v944_v28 = vmul.f32 %v912_v19, %v912_v19 }
 0x34b   :  { %v964_v58 = vadd.f32 %v963_v43, %v933_v40  ;;  %v914_v43 = vsub.f32 %v2317_v0, %v2403_v18 }
 0x34d   :  { %v965_v49 = vadd.f32 %v964_v58, %v934_v29  ;;  %v945_v58 = vmul.f32 %v913_v39, %v913_v39  ;;  %v946_v52 = vmul.f32 %v914_v43, %v914_v43 }
 0x34f   :  { %v966_v31 = vadd.f32 %v965_v49, %v935_v46  ;;  %v916_v49 = vsub.f32 %v2331_v6, %v2403_v18 }
 0x351   :  { %v967_v32 = vadd.f32 %v966_v31, %v936_v56  ;;  %v917_v31 = vsub.f32 %v2340_v14, %v2403_v18  ;;  %v948_v12 = vmul.f32 %v916_v49, %v916_v49 }
 0x353   :  { %v968_v37 = vadd.f32 %v967_v32, %v937_v23  ;;  %v918_v32 = vsub.f32 %v2351_v38, %v2403_v18  ;;  %v949_v17 = vmul.f32 %v917_v31, %v917_v31 }
 0x355   :  { %v969_v42 = vadd.f32 %v968_v37, %v938_v4  ;;  %v919_v37 = vsub.f32 %v2360_v21, %v2403_v18  ;;  %v950_v8 = vmul.f32 %v918_v32, %v918_v32 }
 0x357   :  { %v970_v11 = vadd.f32 %v969_v42, %v939_v5  ;;  %v920_v42 = vsub.f32 %v2369_v30, %v2403_v18  ;;  %v951_v44 = vmul.f32 %v919_v37, %v919_v37  ;;  %v329_v37 = vld [vmem:[%s2858_s4 + $0x3] sm:$0x1] }
 0x359   :  { %v971_v15 = vadd.f32 %v970_v11, %v940_v10  ;;  %v921_v11 = vsub.f32 %v2382_v24, %v2403_v18 }
 0x35b   :  { %v972_v26 = vadd.f32 %v971_v15, %v941_v51  ;;  %v952_v15 = vmul.f32 %v920_v42, %v920_v42 }
 0x35d   :  { %v973_v40 = vadd.f32 %v972_v26, %v942_v60  ;;  %v953_v60 = vmul.f32 %v921_v11, %v921_v11 }
 0x35f   :  { %v974_v29 = vadd.f32 %v973_v40, %v943_v27 }
 0x361   :  { %v975_v46 = vadd.f32 %v974_v29, %v944_v28 }
 0x363   :  { %v976_v56 = vadd.f32 %v975_v46, %v945_v58 }
 0x365   :  { %v977_v23 = vadd.f32 %v976_v56, %v946_v52 }
 0x367   :  { %v978_v4 = vadd.f32 %v977_v23, %v947_v55  ;;  %v328_v23 = vld [vmem:[%s2858_s4 + $0x2] sm:$0x1] }
 0x369   :  { %v979_v5 = vadd.f32 %v978_v4, %v948_v12 }
 0x36b   :  { %v980_v10 = vadd.f32 %v979_v5, %v949_v17 }
 0x36d   :  { %v981_v51 = vadd.f32 %v980_v10, %v950_v8 }
 0x36f   :  { %v982_v19 = vadd.f32 %v981_v51, %v951_v44 }
 0x371   :  { %v983_v26 = vadd.f32 %v982_v19, %v952_v15 }
 0x373   :  { %v984_v39 = vadd.f32 %v983_v26, %v953_v60 }
 0x375   :  { %v985_v27 = vrot.slane %v984_v39, 4 }
 0x377   :  { %v986_v40 = vadd.f32 %v985_v27, %v984_v39 }
 0x379   :  { %v987_v43 = vrot.slane %v986_v40, 2 }
 0x37b   :  { %v988_v28 = vadd.f32 %v987_v43, %v986_v40 }
 0x37d   :  { %v989_v29 = vrot.slane %v988_v28, 1 }
 0x37f   :  { %v990_v58 = vadd.f32 %v989_v29, %v988_v28 }
 0x381   :  { %v992_v45 = vmul.f32 0.00390625, %v990_v58 }
 0x383   :  { %v993_v46 = vadd.f32 1e-05, %v992_v45 }
 0x385   :  { %1851 = vrsqrt.f32 %v993_v46  ;;  %vm1000_vm5 = vweird.f32 %v993_v46 }
 0x38b   :  { %v1852_v49 = vpop.eup %1851 }
 0x38c   :  { %v995_v52 = vmul.f32 %v1852_v49, %v993_v46  ;;  %vm1001_vm4 = vweird.f32 %v1852_v49 }
 0x38d   :  { %vm1002_vm6 = vmor %vm1000_vm5, %vm1001_vm4 }
 0x38e   :  { %v996_v56 = vmul.f32 %v1852_v49, %v995_v52 }
 0x390   :  { %v997_v31 = vmul.f32 0.5, %v996_v56 }
 0x392   :  { %v998_v55 = vsub.f32 1.5, %v997_v31 }
 0x394   :  { %v999_v32 = vmul.f32 %v1852_v49, %v998_v55 }
 0x396   :  { %v1003_v12 = vsel %vm1002_vm6, %v1852_v49, %v999_v32 }
 0x397   :  { %v1004_v4 = vmul.f32 %v1003_v12, %v328_v23 }
 0x399   :  { %v1005_v17 = vmul.f32 %v1004_v4, %v2403_v18  ;;  %v2476_v5 = vperm.slane %v1004_v4, 0 }
 0x39b   :  { %v1006_v42 = vsub.f32 %v329_v37, %v1005_v17  ;;  %v1008_v8 = vmul.f32 %v2476_v5, %v2283_v9  ;;  %v1009_v10 = vmul.f32 %v2476_v5, %v2285_v25  ;;  %v1032_v44 = vmul.f32 %v2476_v5, %v2317_v0 }
 0x39c   :  { %v1033_v51 = vmul.f32 %v2476_v5, %v2321_v36  ;;  %v1010_v9 = vmul.f32 %v2476_v5, %v2287_v41  ;;  %v1011_v25 = vmul.f32 %v2476_v5, %v2289_v47  ;;  %v1034_v43 = vmul.f32 %v2476_v5, %v2331_v6 }
 0x39d   :  { %v2482_v11 = vperm.slane %v1006_v42, 0  ;;  %v1035_v28 = vmul.f32 %v2476_v5, %v2340_v14  ;;  %v1016_v49 = vmul.f32 %v2476_v5, %v2299_v33  ;;  %v1017_v6 = vmul.f32 %v2476_v5, %v2301_v59 }
 0x39e   :  { %v1018_v31 = vmul.f32 %v2476_v5, %v2303_v2  ;;  %v1019_v55 = vmul.f32 %v2476_v5, %v2305_v61  ;;  %v1020_v12 = vmul.f32 %v2476_v5, %v2307_v34  ;;  %v1021_v59 = vmul.f32 %v2476_v5, %v2309_v7 }
 0x39f   :  { %v1041_v15 = vadd.f32 %v2482_v11, %v1008_v8  ;;  %v1042_v18 = vadd.f32 %v2482_v11, %v1009_v10  ;;  %v1065_v19 = vadd.f32 %v2482_v11, %v1032_v44  ;;  %v1066_v60 = vadd.f32 %v2482_v11, %v1033_v51 }
 0x3a0   :  { %v1043_v36 = vadd.f32 %v2482_v11, %v1010_v9  ;;  %v1044_v40 = vadd.f32 %v2482_v11, %v1011_v25  ;;  %v1067_v41 = vadd.f32 %v2482_v11, %v1034_v43  ;;  %v1068_v47 = vadd.f32 %v2482_v11, %v1035_v28 }
 0x3a1   :  { %v1073_v26 = vmax.f32 %v1041_v15, 0.0  ;;  %v1074_v39 = vmax.f32 %v1042_v18, 0.0  ;;  %v1097_v0 = vmax.f32 %v1065_v19, 0.0  ;;  %v1098_v27 = vmax.f32 %v1066_v60, 0.0 }
 0x3a2   :  { %v1075_v45 = vmax.f32 %v1043_v36, 0.0  ;;  %v1076_v46 = vmax.f32 %v1044_v40, 0.0  ;;  %v1099_v52 = vmax.f32 %v1067_v41, 0.0  ;;  %v1100_v56 = vmax.f32 %v1068_v47, 0.0 }
 0x3a3   :  { %v1105_v29 = vpack.c.bf16 %v1074_v39, %v1073_v26  ;;  %v1117_v58 = vpack.c.bf16 %v1098_v27, %v1097_v0  ;;  %v1049_v14 = vadd.f32 %v2482_v11, %v1016_v49  ;;  %v1050_v32 = vadd.f32 %v2482_v11, %v1017_v6 }
 0x3a4   :  { %v1106_v23 = vpack.c.bf16 %v1076_v46, %v1075_v45  ;;  %v1051_v4 = vadd.f32 %v2482_v11, %v1018_v31  ;;  %v1052_v37 = vadd.f32 %v2482_v11, %v1019_v55  ;;  %v1118_v17 = vpack.c.bf16 %v1100_v56, %v1099_v52 }
 0x3a5   :  { %1193 = vmatmul.bf16.vlgmr.msra.gmra.mxu2 %v1105_v29  ;;  %1253 = vmatmul.bf16.vlgmr.msra.gmra.mxu3 %v1117_v58  ;;  %v1081_v33 = vmax.f32 %v1049_v14, 0.0  ;;  %v1082_v42 = vmax.f32 %v1050_v32, 0.0  ;;  %v1053_v2 = vadd.f32 %v2482_v11, %v1020_v12  ;;  %v1022_v61 = vmul.f32 %v2476_v5, %v2311_v62 }
 0x3a6   :  { %v1083_v8 = vmax.f32 %v1051_v4, 0.0  ;;  %v1084_v10 = vmax.f32 %v1052_v37, 0.0  ;;  %v1054_v44 = vadd.f32 %v2482_v11, %v1021_v59  ;;  %v1023_v34 = vmul.f32 %v2476_v5, %v2313_v63 }
 0x3a7   :  { %v2526_v51 = vpack.c.bf16 %v1082_v42, %v1081_v33  ;;  %v1085_v15 = vmax.f32 %v1053_v2, 0.0  ;;  %v1055_v18 = vadd.f32 %v2482_v11, %v1022_v61  ;;  %v1024_v7 = vmul.f32 %v2476_v5, %v2315_v35 }
 0x3a8   :  { %v2531_v19 = vpack.c.bf16 %v1084_v10, %v1083_v8  ;;  %v1086_v60 = vmax.f32 %v1054_v44, 0.0  ;;  %v1056_v62 = vadd.f32 %v2482_v11, %v1023_v34  ;;  %v1025_v9 = vmul.f32 %v2476_v5, %v2319_v3 }
 0x3a9   :  { %v1087_v25 = vmax.f32 %v1055_v18, 0.0  ;;  %v1057_v26 = vadd.f32 %v2482_v11, %v1024_v7  ;;  %v1026_v63 = vmul.f32 %v2476_v5, %v2326_v16  ;;  %v1027_v39 = vmul.f32 %v2476_v5, %v2334_v48 }
 0x3aa   :  { %v1111_v0 = vpack.c.bf16 %v1086_v60, %v1085_v15  ;;  %v1088_v27 = vmax.f32 %v1056_v62, 0.0  ;;  %v1058_v35 = vadd.f32 %v2482_v11, %v1025_v9  ;;  %v1028_v36 = vmul.f32 %v2476_v5, %v2342_v54 }
 0x3ab   :  { %v1089_v40 = vmax.f32 %v1057_v26, 0.0  ;;  %v1059_v43 = vadd.f32 %v2482_v11, %v1026_v63  ;;  %v1060_v3 = vadd.f32 %v2482_v11, %v1027_v39  ;;  %v1029_v28 = vmul.f32 %v2476_v5, %v2348_v22 }
 0x3ac   :  { %v1112_v29 = vpack.c.bf16 %v1088_v27, %v1087_v25  ;;  %v1090_v16 = vmax.f32 %v1058_v35, 0.0  ;;  %v1061_v58 = vadd.f32 %v2482_v11, %v1028_v36  ;;  %v1030_v48 = vmul.f32 %v2476_v5, %v2356_v20 }
 0x3ad   :  { %v1091_v41 = vmax.f32 %v1059_v43, 0.0  ;;  %v1092_v47 = vmax.f32 %v1060_v3, 0.0  ;;  %v1062_v45 = vadd.f32 %v2482_v11, %v1029_v28  ;;  %v1031_v54 = vmul.f32 %v2476_v5, %v2364_v1 }
 0x3ae   :  { %v1113_v46 = vpack.c.bf16 %v1090_v16, %v1089_v40  ;;  %v1093_v49 = vmax.f32 %v1061_v58, 0.0  ;;  %v1063_v22 = vadd.f32 %v2482_v11, %v1030_v48  ;;  %v1012_v55 = vmul.f32 %v2476_v5, %v2291_v13 }
 0x3af   :  { %v1114_v52 = vpack.c.bf16 %v1092_v47, %v1091_v41  ;;  %v1094_v56 = vmax.f32 %v1062_v45, 0.0  ;;  %v1064_v6 = vadd.f32 %v2482_v11, %v1031_v54  ;;  %v1013_v32 = vmul.f32 %v2476_v5, %v2293_v57 }
 0x3b0   :  { %v1095_v14 = vmax.f32 %v1063_v22, 0.0  ;;  %v1036_v1 = vmul.f32 %v2476_v5, %v2351_v38  ;;  %v1045_v33 = vadd.f32 %v2482_v11, %v1012_v55  ;;  %v1014_v38 = vmul.f32 %v2476_v5, %v2295_v50 }
 0x3b1   :  { %v1115_v31 = vpack.c.bf16 %v1094_v56, %v1093_v49  ;;  %v1096_v20 = vmax.f32 %v1064_v6, 0.0  ;;  %v1046_v4 = vadd.f32 %v2482_v11, %v1013_v32  ;;  %v1038_v8 = vmul.f32 %v2476_v5, %v2369_v30 }
 0x3b2   :  { %v1069_v37 = vadd.f32 %v2482_v11, %v1036_v1  ;;  %v1039_v10 = vmul.f32 %v2476_v5, %v2382_v24  ;;  %v1047_v44 = vadd.f32 %v2482_v11, %v1014_v38 }
 0x3b3   :  { %v1116_v12 = vpack.c.bf16 %v1096_v20, %v1095_v14  ;;  %v1078_v13 = vmax.f32 %v1046_v4, 0.0  ;;  %v1071_v15 = vadd.f32 %v2482_v11, %v1038_v8 }
 0x3b4   :  { %v1101_v42 = vmax.f32 %v1069_v37, 0.0  ;;  %v1072_v18 = vadd.f32 %v2482_v11, %v1039_v10  ;;  %v1079_v7 = vmax.f32 %v1047_v44, 0.0 }
 0x3b5   :  { %1198 = vmatmul.bf16.gmra.mxu2 %v1106_v23  ;;  %1258 = vmatmul.bf16.gmra.mxu3 %v1118_v17  ;;  %v1037_v23 = vmul.f32 %v2476_v5, %v2360_v21  ;;  %v1077_v17 = vmax.f32 %v1045_v33, 0.0  ;;  %v1015_v21 = vmul.f32 %v2476_v5, %v2297_v53  ;;  %v1103_v50 = vmax.f32 %v1071_v15, 0.0 }
 0x3b6   :  { %v1104_v62 = vmax.f32 %v1072_v18, 0.0 }
 0x3b7   :  { %v1070_v59 = vadd.f32 %v2482_v11, %v1037_v23  ;;  %v1107_v57 = vpack.c.bf16 %v1078_v13, %v1077_v17  ;;  %v1048_v34 = vadd.f32 %v2482_v11, %v1015_v21 }
 0x3b8   :  { %v1120_v53 = vpack.c.bf16 %v1104_v62, %v1103_v50 }
 0x3b9   :  { %v1102_v2 = vmax.f32 %v1070_v59, 0.0  ;;  %v1080_v60 = vmax.f32 %v1048_v34, 0.0 }
 0x3bb   :  { %v1119_v61 = vpack.c.bf16 %v1102_v2, %v1101_v42  ;;  %v1108_v9 = vpack.c.bf16 %v1080_v60, %v1079_v7 }
 0x3c5   :  { %1203 = vmatmul.bf16.gmra.mxu2 %v1107_v57  ;;  %1263 = vmatmul.bf16.gmra.mxu3 %v1119_v61 }
 0x3d5   :  { %1208 = vmatmul.bf16.gmra.mxu2 %v1108_v9  ;;  %1268 = vmatmul.bf16.gmra.mxu3 %v1120_v53 }
 0x3e5   :  { %1213 = vmatmul.bf16.gmra.mxu2 %v2526_v51 }
 0x3f5   :  { %1218 = vmatmul.bf16.gmra.mxu2 %v2531_v19 }
 0x405   :  { %1223 = vmatmul.bf16.gmra.mxu2 %v1111_v0 }
 0x415   :  { %1228 = vmatmul.bf16.gmra.mxu2 %v1112_v29 }
 0x425   :  { %1233 = vmatmul.bf16.gmra.mxu2 %v1113_v46 }
 0x428   :  { %v2582_v30 = vpop.f32.mrf.mxu2  ;;  %v2616_v28 = vpop.f32.mrf.mxu3 }
 0x430   :  { %v2584_v24 = vpop.f32.mrf.mxu2  ;;  %v2620_v16 = vpop.f32.mrf.mxu3 }
 0x431   :  { %v1338_v58 = vadd.f32 %v2584_v24, %v2582_v30 }
 0x435   :  { %1238 = vmatmul.bf16.gmra.mxu2 %v1114_v52 }
 0x438   :  { %v2586_v5 = vpop.f32.mrf.mxu2  ;;  %v2630_v46 = vpop.f32.mrf.mxu3 }
 0x439   :  { %v1339_v48 = vadd.f32 %v1338_v58, %v2586_v5 }
 0x440   :  { %v2588_v11 = vpop.f32.mrf.mxu2 }
 0x441   :  { %v1340_v47 = vadd.f32 %v1339_v48, %v2588_v11 }
 0x445   :  { %1243 = vmatmul.bf16.gmra.mxu2 %v1115_v31  ;;  %v2639_v31 = vpop.f32.mrf.mxu3 }
 0x448   :  { %v2590_v25 = vpop.f32.mrf.mxu2 }
 0x449   :  { %v1341_v45 = vadd.f32 %v1340_v47, %v2590_v25 }
 0x44d   :  { %v2650_v4 = vpop.f32.mrf.mxu3 }
 0x450   :  { %v2592_v26 = vpop.f32.mrf.mxu2 }
 0x451   :  { %v1342_v54 = vadd.f32 %v1341_v45, %v2592_v26 }
 0x455   :  { %1248 = vmatmul.bf16.gmra.mxu2 %v1116_v12  ;;  %v2659_v57 = vpop.f32.mrf.mxu3 }
 0x458   :  { %v2594_v51 = vpop.f32.mrf.mxu2 }
 0x459   :  { %v1343_v49 = vadd.f32 %v1342_v54, %v2594_v51 }
 0x45d   :  { %v2668_v34 = vpop.f32.mrf.mxu3 }
 0x460   :  { %v2596_v19 = vpop.f32.mrf.mxu2 }
 0x461   :  { %v1344_v52 = vadd.f32 %v1343_v49, %v2596_v19 }
 0x465   :  { %v2675_v62 = vpop.f32.mrf.mxu3 }
 0x468   :  { %v2598_v63 = vpop.f32.mrf.mxu2 }
 0x469   :  { %v1345_v56 = vadd.f32 %v1344_v52, %v2598_v63 }
 0x470   :  { %v2600_v39 = vpop.f32.mrf.mxu2 }
 0x471   :  { %v1346_v6 = vadd.f32 %v1345_v56, %v2600_v39 }
 0x478   :  { %v2602_v0 = vpop.f32.mrf.mxu2 }
 0x479   :  { %v1347_v14 = vadd.f32 %v1346_v6, %v2602_v0 }
 0x480   :  { %v2604_v27 = vpop.f32.mrf.mxu2 }
 0x481   :  { %v1348_v55 = vadd.f32 %v1347_v14, %v2604_v27 }
 0x488   :  { %v2606_v35 = vpop.f32.mrf.mxu2 }
 0x489   :  { %v1349_v32 = vadd.f32 %v1348_v55, %v2606_v35 }
 0x490   :  { %v2608_v36 = vpop.f32.mrf.mxu2 }
 0x491   :  { %v1350_v1 = vadd.f32 %v1349_v32, %v2608_v36 }
 0x498   :  { %v2610_v40 = vpop.f32.mrf.mxu2 }
 0x499   :  { %v1351_v23 = vadd.f32 %v1350_v1, %v2610_v40 }
 0x4a0   :  { %v2612_v43 = vpop.f32.mrf.mxu2 }
 0x4a1   :  { %v1352_v33 = vadd.f32 %v1351_v23, %v2612_v43 }
 0x4a8   :  { %v2614_v3 = vpop.f32.mrf.mxu2 }
 0x4a9   :  { %v1353_v37 = vadd.f32 %v1352_v33, %v2614_v3 }
 0x4b0   :  { %v2618_v29 = vpop.f32.mrf.mxu2 }
 0x4b1   :  { %v1354_v59 = vadd.f32 %v1353_v37, %v2618_v29 }
 0x4b8   :  { %v2625_v41 = vpop.f32.mrf.mxu2 }
 0x4b9   :  { %v1355_v17 = vadd.f32 %v1354_v59, %v2625_v41 }
 0x4c0   :  { %v2633_v22 = vpop.f32.mrf.mxu2 }
 0x4c1   :  { %v1356_v42 = vadd.f32 %v1355_v17, %v2633_v22 }
 0x4c8   :  { %v2641_v20 = vpop.f32.mrf.mxu2 }
 0x4c9   :  { %v1357_v2 = vadd.f32 %v1356_v42, %v2641_v20 }
 0x4d0   :  { %v2647_v12 = vpop.f32.mrf.mxu2 }
 0x4d1   :  { %v1358_v61 = vadd.f32 %v1357_v2, %v2647_v12 }
 0x4d8   :  { %v2655_v13 = vpop.f32.mrf.mxu2 }
 0x4d9   :  { %v1359_v38 = vadd.f32 %v1358_v61, %v2655_v13 }
 0x4e0   :  { %v2663_v21 = vpop.f32.mrf.mxu2 }
 0x4e1   :  { %v1360_v8 = vadd.f32 %v1359_v38, %v2663_v21 }
 0x4e3   :  { %v1361_v10 = vadd.f32 %v1360_v8, %v2616_v28 }
 0x4e5   :  { %v1362_v44 = vadd.f32 %v1361_v10, %v2620_v16 }
 0x4e7   :  { %v1363_v15 = vadd.f32 %v1362_v44, %v2630_v46 }
 0x4e9   :  { %v1364_v18 = vadd.f32 %v1363_v15, %v2639_v31 }
 0x4eb   :  { %v1365_v7 = vadd.f32 %v1364_v18, %v2650_v4 }
 0x4ed   :  { %v1366_v60 = vadd.f32 %v1365_v7, %v2659_v57 }
 0x4ef   :  { %v1367_v50 = vadd.f32 %v1366_v60, %v2668_v34 }
 0x4f1   :  { %v1368_v9 = vadd.f32 %v1367_v50, %v2675_v62 }
 0x4f3   :  { %v1369_v53 = vrot.slane %v1368_v9, 4 }
 0x4f5   :  { %v1370_v58 = vadd.f32 %v1369_v53, %v1368_v9 }
 0x4f7   :  { %v1371_v48 = vrot.slane %v1370_v58, 2 }
 0x4f9   :  { %v1372_v47 = vadd.f32 %v1371_v48, %v1370_v58 }
 0x4fb   :  { %v1373_v45 = vrot.slane %v1372_v47, 1 }
 0x4fd   :  { %v1374_v54 = vadd.f32 %v1373_v45, %v1372_v47 }
 0x4ff   :  { %v2678_v49 = vmul.f32 0.00390625, %v1374_v54 }
 0x501   :  { %v1377_v52 = vsub.f32 %v2582_v30, %v2678_v49  ;;  %v1378_v56 = vsub.f32 %v2584_v24, %v2678_v49  ;;  %v1379_v6 = vsub.f32 %v2586_v5, %v2678_v49  ;;  %v1380_v32 = vsub.f32 %v2588_v11, %v2678_v49 }
 0x502   :  { %v1381_v1 = vsub.f32 %v2590_v25, %v2678_v49  ;;  %v1382_v37 = vsub.f32 %v2592_v26, %v2678_v49  ;;  %v1383_v42 = vsub.f32 %v2594_v51, %v2678_v49  ;;  %v1384_v38 = vsub.f32 %v2596_v19, %v2678_v49 }
 0x503   :  { %v1409_v14 = vmul.f32 %v1377_v52, %v1377_v52  ;;  %v1410_v55 = vmul.f32 %v1378_v56, %v1378_v56  ;;  %v1411_v23 = vmul.f32 %v1379_v6, %v1379_v6  ;;  %v1412_v59 = vmul.f32 %v1380_v32, %v1380_v32 }
 0x504   :  { %v1413_v2 = vmul.f32 %v1381_v1, %v1381_v1  ;;  %v1414_v8 = vmul.f32 %v1382_v37, %v1382_v37  ;;  %v1385_v44 = vsub.f32 %v2598_v63, %v2678_v49  ;;  %v1415_v15 = vmul.f32 %v1383_v42, %v1383_v42 }
 0x505   :  { %v1441_v33 = vadd.f32 %v1410_v55, %v1409_v14  ;;  %v1386_v7 = vsub.f32 %v2600_v39, %v2678_v49  ;;  %v1416_v60 = vmul.f32 %v1384_v38, %v1384_v38  ;;  %v1387_v9 = vsub.f32 %v2602_v0, %v2678_v49 }
 0x506   :  { %v1417_v53 = vmul.f32 %v1385_v44, %v1385_v44  ;;  %v1388_v48 = vsub.f32 %v2604_v27, %v2678_v49  ;;  %v1389_v54 = vsub.f32 %v2606_v35, %v2678_v49  ;;  %v1390_v6 = vsub.f32 %v2608_v36, %v2678_v49 }
 0x507   :  { %v1442_v17 = vadd.f32 %v1441_v33, %v1411_v23  ;;  %v1418_v47 = vmul.f32 %v1386_v7, %v1386_v7  ;;  %v1419_v52 = vmul.f32 %v1387_v9, %v1387_v9  ;;  %v1391_v32 = vsub.f32 %v2610_v40, %v2678_v49 }
 0x508   :  { %v1420_v14 = vmul.f32 %v1388_v48, %v1388_v48  ;;  %v1421_v1 = vmul.f32 %v1389_v54, %v1389_v54  ;;  %v1392_v33 = vsub.f32 %v2612_v43, %v2678_v49  ;;  %v1422_v37 = vmul.f32 %v1390_v6, %v1390_v6 }
 0x509   :  { %v1443_v61 = vadd.f32 %v1442_v17, %v1412_v59  ;;  %v1393_v17 = vsub.f32 %v2614_v3, %v2678_v49  ;;  %v1423_v42 = vmul.f32 %v1391_v32, %v1391_v32 }
 0x50a   :  { %v1424_v38 = vmul.f32 %v1392_v33, %v1392_v33 }
 0x50b   :  { %v1444_v10 = vadd.f32 %v1443_v61, %v1413_v2  ;;  %v1394_v61 = vsub.f32 %v2618_v29, %v2678_v49  ;;  %v1425_v44 = vmul.f32 %v1393_v17, %v1393_v17 }
 0x50d   :  { %v1445_v18 = vadd.f32 %v1444_v10, %v1414_v8  ;;  %v1395_v10 = vsub.f32 %v2625_v41, %v2678_v49  ;;  %v1426_v7 = vmul.f32 %v1394_v61, %v1394_v61 }
 0x50f   :  { %v1446_v50 = vadd.f32 %v1445_v18, %v1415_v15  ;;  %v1396_v18 = vsub.f32 %v2633_v22, %v2678_v49  ;;  %v1427_v9 = vmul.f32 %v1395_v10, %v1395_v10 }
 0x511   :  { %v1447_v58 = vadd.f32 %v1446_v50, %v1416_v60  ;;  %v1397_v50 = vsub.f32 %v2641_v20, %v2678_v49  ;;  %v1428_v48 = vmul.f32 %v1396_v18, %v1396_v18 }
 0x513   :  { %v1448_v45 = vadd.f32 %v1447_v58, %v1417_v53  ;;  %v1398_v58 = vsub.f32 %v2647_v12, %v2678_v49  ;;  %v1429_v54 = vmul.f32 %v1397_v50, %v1397_v50 }
 0x515   :  { %v1449_v56 = vadd.f32 %v1448_v45, %v1418_v47  ;;  %v1399_v45 = vsub.f32 %v2655_v13, %v2678_v49  ;;  %v1430_v6 = vmul.f32 %v1398_v58, %v1398_v58 }
 0x517   :  { %v1450_v55 = vadd.f32 %v1449_v56, %v1419_v52  ;;  %v1400_v56 = vsub.f32 %v2663_v21, %v2678_v49  ;;  %v1431_v32 = vmul.f32 %v1399_v45, %v1399_v45 }
 0x519   :  { %v1451_v23 = vadd.f32 %v1450_v55, %v1420_v14  ;;  %v1401_v55 = vsub.f32 %v2616_v28, %v2678_v49  ;;  %v1432_v33 = vmul.f32 %v1400_v56, %v1400_v56 }
 0x51b   :  { %v1452_v59 = vadd.f32 %v1451_v23, %v1421_v1  ;;  %v1402_v23 = vsub.f32 %v2620_v16, %v2678_v49  ;;  %v1433_v17 = vmul.f32 %v1401_v55, %v1401_v55 }
 0x51d   :  { %v1453_v2 = vadd.f32 %v1452_v59, %v1422_v37  ;;  %v1403_v59 = vsub.f32 %v2630_v46, %v2678_v49  ;;  %v1434_v61 = vmul.f32 %v1402_v23, %v1402_v23 }
 0x51f   :  { %v1454_v8 = vadd.f32 %v1453_v2, %v1423_v42  ;;  %v1404_v2 = vsub.f32 %v2639_v31, %v2678_v49  ;;  %v1435_v10 = vmul.f32 %v1403_v59, %v1403_v59 }
 0x521   :  { %v1455_v15 = vadd.f32 %v1454_v8, %v1424_v38  ;;  %v1405_v8 = vsub.f32 %v2650_v4, %v2678_v49  ;;  %v1436_v18 = vmul.f32 %v1404_v2, %v1404_v2 }
 0x523   :  { %v1456_v60 = vadd.f32 %v1455_v15, %v1425_v44  ;;  %v1406_v15 = vsub.f32 %v2659_v57, %v2678_v49  ;;  %v1437_v50 = vmul.f32 %v1405_v8, %v1405_v8 }
 0x525   :  { %v1457_v53 = vadd.f32 %v1456_v60, %v1426_v7  ;;  %v1407_v60 = vsub.f32 %v2668_v34, %v2678_v49  ;;  %v1438_v58 = vmul.f32 %v1406_v15, %v1406_v15  ;;  %v331_v15 = vld [vmem:[%s2858_s4 + $0x5] sm:$0x1] }
 0x527   :  { %v1458_v47 = vadd.f32 %v1457_v53, %v1427_v9  ;;  %v1408_v53 = vsub.f32 %v2675_v62, %v2678_v49 }
 0x529   :  { %v1459_v52 = vadd.f32 %v1458_v47, %v1428_v48  ;;  %v1439_v47 = vmul.f32 %v1407_v60, %v1407_v60 }
 0x52b   :  { %v1460_v14 = vadd.f32 %v1459_v52, %v1429_v54  ;;  %v1440_v54 = vmul.f32 %v1408_v53, %v1408_v53 }
 0x52d   :  { %v1461_v1 = vadd.f32 %v1460_v14, %v1430_v6 }
 0x52f   :  { %v1462_v37 = vadd.f32 %v1461_v1, %v1431_v32 }
 0x531   :  { %v1463_v42 = vadd.f32 %v1462_v37, %v1432_v33 }
 0x533   :  { %v1464_v38 = vadd.f32 %v1463_v42, %v1433_v17 }
 0x535   :  { %v1465_v44 = vadd.f32 %v1464_v38, %v1434_v61  ;;  %v330_v38 = vld [vmem:[%s2858_s4 + $0x4] sm:$0x1]  ;;  %s1881_s4 = smov [#allocation2]  }
 0x536   :  { %s1628_s16 = sshll.u32 %s1881_s4, 4  ;;  %s1629_s16 = int_to_ptr.vmem [resolvable:$true] %s1628_s16 }
 0x537   :  { %v1466_v7 = vadd.f32 %v1465_v44, %v1435_v10 }
 0x539   :  { %v1467_v9 = vadd.f32 %v1466_v7, %v1436_v18 }
 0x53b   :  { %v1468_v48 = vadd.f32 %v1467_v9, %v1437_v50 }
 0x53d   :  { %v1469_v45 = vadd.f32 %v1468_v48, %v1438_v58 }
 0x53f   :  { %v1470_v52 = vadd.f32 %v1469_v45, %v1439_v47 }
 0x541   :  { %v1471_v56 = vadd.f32 %v1470_v52, %v1440_v54 }
 0x543   :  { %v1472_v6 = vrot.slane %v1471_v56, 4 }
 0x545   :  { %v1473_v14 = vadd.f32 %v1472_v6, %v1471_v56 }
 0x547   :  { %v1474_v55 = vrot.slane %v1473_v14, 2 }
 0x549   :  { %v1475_v32 = vadd.f32 %v1474_v55, %v1473_v14 }
 0x54b   :  { %v1476_v1 = vrot.slane %v1475_v32, 1 }
 0x54d   :  { %v1477_v23 = vadd.f32 %v1476_v1, %v1475_v32 }
 0x54f   :  { %v1479_v33 = vmul.f32 0.00390625, %v1477_v23 }
 0x551   :  { %v1480_v37 = vadd.f32 1e-05, %v1479_v33 }
 0x553   :  { %1853 = vrsqrt.f32 %v1480_v37  ;;  %vm1487_vm8 = vweird.f32 %v1480_v37 }
 0x559   :  { %v1854_v59 = vpop.eup %1853 }
 0x55a   :  { %v1482_v17 = vmul.f32 %v1854_v59, %v1480_v37  ;;  %vm1488_vm7 = vweird.f32 %v1854_v59 }
 0x55b   :  { %vm1489_vm9 = vmor %vm1487_vm8, %vm1488_vm7 }
 0x55c   :  { %v1483_v42 = vmul.f32 %v1854_v59, %v1482_v17 }
 0x55e   :  { %v1484_v2 = vmul.f32 0.5, %v1483_v42 }
 0x560   :  { %v1485_v61 = vsub.f32 1.5, %v1484_v2 }
 0x562   :  { %v1486_v8 = vmul.f32 %v1854_v59, %v1485_v61 }
 0x564   :  { %v1490_v10 = vsel %vm1489_vm9, %v1854_v59, %v1486_v8 }
 0x565   :  { %v1491_v44 = vmul.f32 %v1490_v10, %v330_v38 }
 0x567   :  { %v1492_v18 = vmul.f32 %v1491_v44, %v2678_v49  ;;  %v2751_v7 = vperm.slane %v1491_v44, 0 }
 0x569   :  { %v1493_v60 = vsub.f32 %v331_v15, %v1492_v18  ;;  %v1518_v50 = vmul.f32 %v2751_v7, %v2663_v21  ;;  %v1495_v48 = vmul.f32 %v2751_v7, %v2582_v30  ;;  %v1496_v47 = vmul.f32 %v2751_v7, %v2584_v24 }
 0x56a   :  { %v1497_v49 = vmul.f32 %v2751_v7, %v2586_v5  ;;  %v1498_v45 = vmul.f32 %v2751_v7, %v2588_v11  ;;  %v1499_v21 = vmul.f32 %v2751_v7, %v2590_v25  ;;  %v1500_v52 = vmul.f32 %v2751_v7, %v2592_v26 }
 0x56b   :  { %v2755_v9 = vperm.slane %v1493_v60, 0  ;;  %v1501_v5 = vmul.f32 %v2751_v7, %v2594_v51  ;;  %v1502_v11 = vmul.f32 %v2751_v7, %v2596_v19  ;;  %v1503_v14 = vmul.f32 %v2751_v7, %v2598_v63 }
 0x56c   :  { %v1504_v26 = vmul.f32 %v2751_v7, %v2600_v39  ;;  %v1505_v37 = vmul.f32 %v2751_v7, %v2602_v0  ;;  %v1506_v63 = vmul.f32 %v2751_v7, %v2604_v27  ;;  %v1507_v42 = vmul.f32 %v2751_v7, %v2606_v35 }
 0x56d   :  { %v1551_v53 = vadd.f32 %v2755_v9, %v1518_v50  ;;  %v1528_v54 = vadd.f32 %v2755_v9, %v1495_v48  ;;  %v1529_v56 = vadd.f32 %v2755_v9, %v1496_v47  ;;  %v1530_v30 = vadd.f32 %v2755_v9, %v1497_v49 }
 0x56e   :  { %v1531_v24 = vadd.f32 %v2755_v9, %v1498_v45  ;;  %v1532_v6 = vadd.f32 %v2755_v9, %v1499_v21  ;;  %v1533_v25 = vadd.f32 %v2755_v9, %v1500_v52  ;;  %v1534_v55 = vadd.f32 %v2755_v9, %v1501_v5 }
 0x56f   :  { %v1583_v58 = vmax.f32 %v1551_v53, 0.0  ;;  %v1560_v32 = vmax.f32 %v1528_v54, 0.0  ;;  %v1535_v1 = vadd.f32 %v2755_v9, %v1502_v11  ;;  %v1561_v23 = vmax.f32 %v1529_v56, 0.0 }
 0x570   :  { %v1562_v51 = vmax.f32 %v1530_v30, 0.0  ;;  %v1563_v33 = vmax.f32 %v1531_v24, 0.0  ;;  %v1536_v19 = vadd.f32 %v2755_v9, %v1503_v14  ;;  %v1564_v59 = vmax.f32 %v1532_v6, 0.0 }
 0x571   :  { %1615 = vst [vmem:[#allocation2 + $0xb8] sm:$0xff] %v1583_v58  ;;  %v1537_v39 = vadd.f32 %v2755_v9, %v1504_v26  ;;  %v1565_v17 = vmax.f32 %v1533_v25, 0.0  ;;  %v1538_v2 = vadd.f32 %v2755_v9, %v1505_v37  ;;  %v1566_v61 = vmax.f32 %v1534_v55, 0.0 }
 0x572   :  { %1592 = vst [vmem:[#allocation2] sm:$0xff] %v1560_v32  ;;  %v1508_v0 = vmul.f32 %v2751_v7, %v2608_v36  ;;  %v1539_v38 = vadd.f32 %v2755_v9, %v1506_v63  ;;  %v1567_v8 = vmax.f32 %v1535_v1, 0.0  ;;  %v1509_v27 = vmul.f32 %v2751_v7, %v2610_v40 }
 0x573   :  { %1593 = vst [vmem:[#allocation2 + $0x8] sm:$0xff] %v1561_v23  ;;  %v1540_v10 = vadd.f32 %v2755_v9, %v1507_v42  ;;  %v1568_v44 = vmax.f32 %v1536_v19, 0.0  ;;  %v1510_v35 = vmul.f32 %v2751_v7, %v2612_v43  ;;  %v1569_v18 = vmax.f32 %v1537_v39, 0.0 }
 0x574   :  { %1594 = vst [vmem:[#allocation2 + $0x10] sm:$0xff] %v1562_v51  ;;  %v1541_v15 = vadd.f32 %v2755_v9, %v1508_v0  ;;  %v1511_v36 = vmul.f32 %v2751_v7, %v2614_v3  ;;  %v1542_v60 = vadd.f32 %v2755_v9, %v1509_v27  ;;  %v1570_v50 = vmax.f32 %v1538_v2, 0.0 }
 0x575   :  { %1595 = vst [vmem:[#allocation2 + $0x18] sm:$0xff] %v1563_v33  ;;  %v1512_v40 = vmul.f32 %v2751_v7, %v2618_v29  ;;  %v1543_v53 = vadd.f32 %v2755_v9, %v1510_v35  ;;  %v1571_v58 = vmax.f32 %v1539_v38, 0.0  ;;  %v1513_v43 = vmul.f32 %v2751_v7, %v2625_v41 }
 0x576   :  { %1596 = vst [vmem:[#allocation2 + $0x20] sm:$0xff] %v1564_v59  ;;  %v1544_v48 = vadd.f32 %v2755_v9, %v1511_v36  ;;  %v1572_v47 = vmax.f32 %v1540_v10, 0.0  ;;  %v1514_v3 = vmul.f32 %v2751_v7, %v2633_v22  ;;  %v1573_v45 = vmax.f32 %v1541_v15, 0.0 }
 0x577   :  { %1597 = vst [vmem:[#allocation2 + $0x28] sm:$0xff] %v1565_v17  ;;  %v1545_v49 = vadd.f32 %v2755_v9, %v1512_v40  ;;  %v1515_v29 = vmul.f32 %v2751_v7, %v2641_v20  ;;  %v1546_v21 = vadd.f32 %v2755_v9, %v1513_v43  ;;  %v1574_v54 = vmax.f32 %v1542_v60, 0.0 }
 0x578   :  { %1598 = vst [vmem:[#allocation2 + $0x30] sm:$0xff] %v1566_v61  ;;  %v1516_v41 = vmul.f32 %v2751_v7, %v2647_v12  ;;  %v1547_v52 = vadd.f32 %v2755_v9, %v1514_v3  ;;  %v1575_v56 = vmax.f32 %v1543_v53, 0.0  ;;  %v1517_v22 = vmul.f32 %v2751_v7, %v2655_v13 }
 0x579   :  { %1599 = vst [vmem:[#allocation2 + $0x38] sm:$0xff] %v1567_v8  ;;  %v1548_v30 = vadd.f32 %v2755_v9, %v1515_v29  ;;  %v1576_v24 = vmax.f32 %v1544_v48, 0.0  ;;  %v1519_v20 = vmul.f32 %v2751_v7, %v2616_v28  ;;  %v1577_v6 = vmax.f32 %v1545_v49, 0.0 }
 0x57a   :  { %1600 = vst [vmem:[#allocation2 + $0x40] sm:$0xff] %v1568_v44  ;;  %v1549_v5 = vadd.f32 %v2755_v9, %v1516_v41  ;;  %v1520_v12 = vmul.f32 %v2751_v7, %v2620_v16  ;;  %v1550_v11 = vadd.f32 %v2755_v9, %v1517_v22  ;;  %v1578_v25 = vmax.f32 %v1546_v21, 0.0 }
 0x57b   :  { %1601 = vst [vmem:[#allocation2 + $0x48] sm:$0xff] %v1569_v18  ;;  %v1521_v13 = vmul.f32 %v2751_v7, %v2630_v46  ;;  %v1552_v14 = vadd.f32 %v2755_v9, %v1519_v20  ;;  %v1579_v26 = vmax.f32 %v1547_v52, 0.0  ;;  %v1522_v28 = vmul.f32 %v2751_v7, %v2639_v31 }
 0x57c   :  { %1602 = vst [vmem:[#allocation2 + $0x50] sm:$0xff] %v1570_v50  ;;  %v1553_v55 = vadd.f32 %v2755_v9, %v1520_v12  ;;  %v1580_v32 = vmax.f32 %v1548_v30, 0.0  ;;  %v1523_v16 = vmul.f32 %v2751_v7, %v2650_v4  ;;  %v1581_v23 = vmax.f32 %v1549_v5, 0.0 }
 0x57d   :  { %1603 = vst [vmem:[#allocation2 + $0x58] sm:$0xff] %v1571_v58  ;;  %v1554_v1 = vadd.f32 %v2755_v9, %v1521_v13  ;;  %v1524_v46 = vmul.f32 %v2751_v7, %v2659_v57  ;;  %v1555_v51 = vadd.f32 %v2755_v9, %v1522_v28  ;;  %v1582_v33 = vmax.f32 %v1550_v11, 0.0 }
 0x57e   :  { %1604 = vst [vmem:[#allocation2 + $0x60] sm:$0xff] %v1572_v47  ;;  %v1525_v31 = vmul.f32 %v2751_v7, %v2668_v34  ;;  %v1556_v37 = vadd.f32 %v2755_v9, %v1523_v16  ;;  %v1584_v19 = vmax.f32 %v1552_v14, 0.0  ;;  %v1526_v4 = vmul.f32 %v2751_v7, %v2675_v62 }
 0x57f   :  { %1605 = vst [vmem:[#allocation2 + $0x68] sm:$0xff] %v1573_v45  ;;  %v1557_v59 = vadd.f32 %v2755_v9, %v1524_v46  ;;  %v1585_v63 = vmax.f32 %v1553_v55, 0.0  ;;  %v1586_v39 = vmax.f32 %v1554_v1, 0.0  ;;  %v1587_v42 = vmax.f32 %v1555_v51, 0.0 }
 0x580   :  { %1606 = vst [vmem:[#allocation2 + $0x70] sm:$0xff] %v1574_v54  ;;  %v1558_v57 = vadd.f32 %v2755_v9, %v1525_v31  ;;  %v1559_v17 = vadd.f32 %v2755_v9, %v1526_v4  ;;  %v1588_v34 = vmax.f32 %v1556_v37, 0.0 }
 0x581   :  { %1607 = vst [vmem:[#allocation2 + $0x78] sm:$0xff] %v1575_v56  ;;  %v1589_v2 = vmax.f32 %v1557_v59, 0.0 }
 0x582   :  { %1608 = vst [vmem:[#allocation2 + $0x80] sm:$0xff] %v1576_v24  ;;  %v1590_v62 = vmax.f32 %v1558_v57, 0.0  ;;  %v1591_v7 = vmax.f32 %v1559_v17, 0.0 }
 0x583   :  { %1609 = vst [vmem:[#allocation2 + $0x88] sm:$0xff] %v1577_v6 }
 0x584   :  { %1610 = vst [vmem:[#allocation2 + $0x90] sm:$0xff] %v1578_v25 }
 0x585   :  { %1611 = vst [vmem:[#allocation2 + $0x98] sm:$0xff] %v1579_v26 }
 0x586   :  { %1612 = vst [vmem:[#allocation2 + $0xa0] sm:$0xff] %v1580_v32 }
 0x587   :  { %1613 = vst [vmem:[#allocation2 + $0xa8] sm:$0xff] %v1581_v23 }
 0x588   :  { %1614 = vst [vmem:[#allocation2 + $0xb0] sm:$0xff] %v1582_v33 }
 0x589   :  { %1616 = vst [vmem:[#allocation2 + $0xc0] sm:$0xff] %v1584_v19 }
 0x58a   :  { %1617 = vst [vmem:[#allocation2 + $0xc8] sm:$0xff] %v1585_v63 }
 0x58b   :  { %1618 = vst [vmem:[#allocation2 + $0xd0] sm:$0xff] %v1586_v39 }
 0x58c   :  { %1619 = vst [vmem:[#allocation2 + $0xd8] sm:$0xff] %v1587_v42 }
 0x58d   :  { %1620 = vst [vmem:[#allocation2 + $0xe0] sm:$0xff] %v1588_v34 }
 0x58e   :  { %1621 = vst [vmem:[#allocation2 + $0xe8] sm:$0xff] %v1589_v2 }
 0x58f   :  { %1622 = vst [vmem:[#allocation2 + $0xf0] sm:$0xff] %v1590_v62 }
 0x590   :  { %1623 = vst [vmem:[#allocation2 + $0xf8] sm:$0xff] %v1591_v7 }
 0x591   :  { %1636 = dma.vmem_to_hbm [thread:$0]  %s1629_s16, 4096, %s1631_s18, [#allocation3], %s1882_s19, %s1882_s19, %s1883_s20  }
 0x592   :  { %1879 = dma.done.wait [#allocation3], 4096  }
 0x593   :  { %1880 = vsyncadd [#allocation3], 4294963200 }
 0x594   :  { %1641 = vsyncpa [#allocation3], 1 }

</bundles_post_ra>
